<compile_context>
chip_gen: v7x
topology: tpu7x:2x2x1
jax: 0.10.0
libtpu: 0.0.40
codegen_flags: <defaults>
</compile_context>

<pallas_src>
import functools
import math

import jax
import jax.numpy as jnp
from jax.experimental import pallas as pl
from jax.experimental.pallas import tpu as pltpu

LEAK = 0.1
BN_EPS = 1e-5


def _block_kernel(x_ref, cm_ref, w1_ref, b1_ref, w2_ref, b2_ref, o_ref,
                  ypad_ref, tap_ref, *, H, W_pad):
    """One grid step = one image; pixels flattened lane-dense as P = H * W_pad.

    x_ref   : (1, C, P)          input image (compute dtype), W zero-padded to W_pad
    cm_ref  : (1, P)     f32     column mask: 1.0 where w < W, else 0.0
    w1_ref  : (C2, C)            folded 1x1 conv+BN weight (compute dtype)
    b1_ref  : (C2, 1)    f32     folded bias
    w2_ref  : (C, 9*C2)          folded 3x3 conv+BN weight, taps stacked along K
    b2_ref  : (C, 1)     f32     folded bias
    o_ref   : (1, C, P)  f32     x + block(x); W-padding columns are don't-care
    ypad_ref: (C2, (H+2)*W_pad) f32  y1 with one zero halo row above and below
    tap_ref : (9*C2, P)          staging buffer for the 9 shifted taps
    """
    P = H * W_pad
    C2 = w1_ref.shape[0]
    cdt = tap_ref.dtype

    x = x_ref[0]                                              # (C, P)

    # ---- layer1: 1x1 conv (BN + bias folded) + LeakyReLU, f32 accumulate ----
    z1 = jnp.dot(w1_ref[...], x, preferred_element_type=jnp.float32)
    z1 = z1 + b1_ref[...]
    y1 = jnp.where(z1 > 0, z1, LEAK * z1)                     # (C2, P) f32
    # Zero the W-padding columns so they serve as the conv's zero padding for
    # the dw = +/-1 taps (replaces all per-tap border masks).
    y1 = y1 * cm_ref[...]

    # ---- stage y1 into a zero-haloed buffer: dh offsets become 128-aligned
    # address arithmetic; no row masks needed anywhere.
    ypad_ref[:, pl.ds(0, W_pad)] = jnp.zeros((C2, W_pad), jnp.float32)
    ypad_ref[:, pl.ds(W_pad + P, W_pad)] = jnp.zeros((C2, W_pad), jnp.float32)
    ypad_ref[:, pl.ds(W_pad, P)] = y1

    ypadv = ypad_ref[...]                                     # (C2, (H+2)*W_pad)
    # Only dw = +/-1 need a lane rotate (XLU); two rotates total.
    roll_p = jnp.roll(ypadv, -1, axis=1)                      # elem q <- q+1  (dw=+1)
    roll_m = jnp.roll(ypadv, 1, axis=1)                       # elem q <- q-1  (dw=-1)

    # ---- stack the 9 taps along the contraction dim (K = 9*C2) ----
    for dh in (-1, 0, 1):
        s = (dh + 1) * W_pad                                  # 128-aligned slice start
        for dw, src in ((-1, roll_m), (0, ypadv), (1, roll_p)):
            k = (dh + 1) * 3 + (dw + 1)
            tap_ref[pl.ds(k * C2, C2), :] = src[:, s:s + P].astype(cdt)

    # ---- layer2: one deep-K matmul + bias + LeakyReLU ----
    z2 = jnp.dot(w2_ref[...], tap_ref[...], preferred_element_type=jnp.float32)
    z2 = z2 + b2_ref[...]
    y2 = jnp.where(z2 > 0, z2, LEAK * z2)                     # (C, P) f32

    # ---- residual ----
    o_ref[0] = x.astype(jnp.float32) + y2


def _fold_bn(w, b, gamma, beta, mean, var, eps=BN_EPS):
    """Fold an inference-mode BatchNorm into the preceding conv (OIHW weight)."""
    s = gamma / jnp.sqrt(var + eps)
    w_f = w * s.reshape(-1, 1, 1, 1)
    b_f = (b - mean) * s + beta
    return w_f, b_f


def block_forward(x, params, *, compute_dtype=jnp.bfloat16):
    """x: (N, inc, H, W) float32.  Returns (N, inc, H, W) float32."""
    (w1, b1, g1, be1, m1, v1), (w2, b2, g2, be2, m2, v2) = params
    N, C, H, W = x.shape
    C2 = C // 2

    # Lane-dense width: multiple of 128, with at least one zero "separator"
    # column so the dw=+/-1 taps never wrap into the next row's valid pixels.
    W_pad = ((W + 127) // 128) * 128
    if W_pad == W:
        W_pad += 128
    P = H * W_pad

    # Fold BN + conv bias into the conv weights on the host (tiny cost).
    w1f, b1f = _fold_bn(w1, b1, g1, be1, m1, v1)      # (C2, C, 1, 1), (C2,)
    w2f, b2f = _fold_bn(w2, b2, g2, be2, m2, v2)      # (C, C2, 3, 3), (C,)

    w1m = w1f.reshape(C2, C).astype(compute_dtype)                     # (C2, C)
    b1c = b1f.reshape(C2, 1).astype(jnp.float32)                       # (C2, 1)
    # Stack the 9 taps along K: column (kh*3+kw)*C2 + i holds w2f[o, i, kh, kw].
    w2s = jnp.transpose(w2f, (0, 2, 3, 1)).reshape(C, 9 * C2)          # (C, 9*C2)
    w2s = w2s.astype(compute_dtype)
    b2c = b2f.reshape(C, 1).astype(jnp.float32)                        # (C, 1)

    # Column-validity mask over the flattened (h, w_pad) pixel axis.
    col = jnp.arange(P, dtype=jnp.int32) % W_pad
    colmask = (col < W).astype(jnp.float32).reshape(1, P)              # (1, P)

    # Zero-pad W to W_pad, flatten pixels (row-major, free reshape), cast.
    xp = jnp.pad(x, ((0, 0), (0, 0), (0, 0), (0, W_pad - W)))
    x_flat = xp.reshape(N, C, P).astype(compute_dtype)

    kernel = functools.partial(_block_kernel, H=H, W_pad=W_pad)

    # Size the scoped VMEM limit from the actual block + scratch budget.
    bpe = jnp.dtype(compute_dtype).itemsize
    blk_in = C * P * bpe
    blk_out = C * P * 4
    weights = (C2 * C + C * 9 * C2) * bpe + (C2 + C) * 4 + P * 4
    scratch = C2 * (H + 2) * W_pad * 4 + 9 * C2 * P * bpe
    needed = 2 * (blk_in + blk_out) + 2 * weights + scratch + (4 << 20)
    vmem_limit = int(min(64 << 20, max(needed, 16 << 20)))

    out_flat = pl.pallas_call(
        kernel,
        out_shape=jax.ShapeDtypeStruct((N, C, P), jnp.float32),
        grid_spec=pltpu.PrefetchScalarGridSpec(
            num_scalar_prefetch=0,
            grid=(N,),
            in_specs=[
                pl.BlockSpec((1, C, P), lambda n: (n, 0, 0)),   # x (one image)
                pl.BlockSpec((1, P), lambda n: (0, 0)),         # column mask
                pl.BlockSpec((C2, C), lambda n: (0, 0)),        # w1 (folded)
                pl.BlockSpec((C2, 1), lambda n: (0, 0)),        # b1 (folded)
                pl.BlockSpec((C, 9 * C2), lambda n: (0, 0)),    # w2 stacked taps
                pl.BlockSpec((C, 1), lambda n: (0, 0)),         # b2 (folded)
            ],
            out_specs=pl.BlockSpec((1, C, P), lambda n: (n, 0, 0)),
            scratch_shapes=[
                pltpu.VMEM((C2, (H + 2) * W_pad), jnp.float32),  # haloed y1
                pltpu.VMEM((9 * C2, P), compute_dtype),          # stacked taps
            ],
        ),
        compiler_params=pltpu.CompilerParams(
            dimension_semantics=("parallel",),
            vmem_limit_bytes=vmem_limit),
    )(x_flat, colmask, w1m, b1c, w2s, b2c)

    # Drop the W-padding columns (free slice on host).
    return out_flat.reshape(N, C, H, W_pad)[..., :W]


def init_params(key, inc):
    """Deterministic parameters for both conv+BN layers (inference-mode BN)."""
    c2 = inc // 2
    ks = jax.random.split(key, 6)

    def bn_params(k, c):
        kg, kb, km, kv = jax.random.split(k, 4)
        gamma = 1.0 + 0.1 * jax.random.normal(kg, (c,), jnp.float32)
        beta = 0.1 * jax.random.normal(kb, (c,), jnp.float32)
        mean = 0.1 * jax.random.normal(km, (c,), jnp.float32)
        var = 0.5 + jax.random.uniform(kv, (c,), jnp.float32)
        return gamma, beta, mean, var

    w1 = jax.random.normal(ks[0], (c2, inc, 1, 1), jnp.float32) / math.sqrt(inc)
    b1 = 0.05 * jax.random.normal(ks[1], (c2,), jnp.float32)
    g1, be1, m1, v1 = bn_params(ks[2], c2)

    w2 = jax.random.normal(ks[3], (inc, c2, 3, 3), jnp.float32) / math.sqrt(9 * c2)
    b2 = 0.05 * jax.random.normal(ks[4], (inc,), jnp.float32)
    g2, be2, m2, v2 = bn_params(ks[5], inc)

    return (w1, b1, g1, be1, m1, v1), (w2, b2, g2, be2, m2, v2)


def _reference(x, params):
    """Pure-JAX reference (inference-mode BN), high-precision convs."""
    (w1, b1, g1, be1, m1, v1), (w2, b2, g2, be2, m2, v2) = params

    def conv(x, w, b):
        y = jax.lax.conv_general_dilated(
            x, w, window_strides=(1, 1), padding="SAME",
            dimension_numbers=("NCHW", "OIHW", "NCHW"),
            precision=jax.lax.Precision.HIGHEST)
        return y + b.reshape(1, -1, 1, 1)

    def bn(y, g, be, m, v):
        shape = (1, -1, 1, 1)
        return ((y - m.reshape(shape)) / jnp.sqrt(v.reshape(shape) + BN_EPS)
                * g.reshape(shape) + be.reshape(shape))

    h = jax.nn.leaky_relu(bn(conv(x, w1, b1), g1, be1, m1, v1), LEAK)
    h = jax.nn.leaky_relu(bn(conv(h, w2, b2), g2, be2, m2, v2), LEAK)
    return x + h


if __name__ == "__main__":
    inc, N, H, W = 32, 2, 16, 16
    key = jax.random.PRNGKey(0)
    kx, kp = jax.random.split(key)
    x = jax.random.normal(kx, (N, inc, H, W), jnp.float32)
    params = init_params(kp, inc)

    ref = _reference(x, params)

    # Primary (perf) configuration: bf16 MXU operands, f32 accumulation.
    out_bf16 = jax.block_until_ready(
        block_forward(x, params, compute_dtype=jnp.bfloat16))
    assert out_bf16.shape == (N, inc, H, W)
    err_bf16 = float(jnp.max(jnp.abs(out_bf16 - ref)))
    assert jnp.allclose(out_bf16, ref, atol=1.5e-1, rtol=1e-1), (
        f"bf16 max abs err {err_bf16}")

    # Full-precision configuration for a tight numerical check.
    out_f32 = jax.block_until_ready(
        block_forward(x, params, compute_dtype=jnp.float32))
    err_f32 = float(jnp.max(jnp.abs(out_f32 - ref)))
    assert jnp.allclose(out_f32, ref, atol=1e-3, rtol=1e-3), (
        f"f32 max abs err {err_f32}")

    print("KERNEL_OK")
</pallas_src>

<mosaic_0001>
module attributes {stable_mosaic.version = 11 : i64} {
  func.func @_block_kernel(%arg0: i32, %arg1: memref<1x32x2048xbf16, #tpu.memory_space<vmem>>, %arg2: memref<1x2048xf32, #tpu.memory_space<vmem>>, %arg3: memref<16x32xbf16, #tpu.memory_space<vmem>>, %arg4: memref<16x1xf32, #tpu.memory_space<vmem>>, %arg5: memref<32x144xbf16, #tpu.memory_space<vmem>>, %arg6: memref<32x1xf32, #tpu.memory_space<vmem>>, %arg7: memref<1x32x2048xf32, #tpu.memory_space<vmem>>, %arg8: memref<16x2304xf32, #tpu.memory_space<vmem>>, %arg9: memref<144x2048xbf16, #tpu.memory_space<vmem>>) attributes {dimension_semantics = [#tpu.dimension_semantics<parallel>], iteration_bounds = array<i64: 2>, scalar_prefetch = 0 : i64, scratch_operands = 2 : i64, tpu.core_type = #tpu.core_type<tc>, window_params = [{transform_indices = @transform_0, window_bounds = array<i64: 1, 32, 2048>}, {pipeline_mode = #tpu.pipeline_mode<synchronous>, transform_indices = @transform_1, window_bounds = array<i64: 1, 2048>}, {pipeline_mode = #tpu.pipeline_mode<synchronous>, transform_indices = @transform_2, window_bounds = array<i64: 16, 32>}, {pipeline_mode = #tpu.pipeline_mode<synchronous>, transform_indices = @transform_3, window_bounds = array<i64: 16, 1>}, {pipeline_mode = #tpu.pipeline_mode<synchronous>, transform_indices = @transform_4, window_bounds = array<i64: 32, 144>}, {pipeline_mode = #tpu.pipeline_mode<synchronous>, transform_indices = @transform_5, window_bounds = array<i64: 32, 1>}, {transform_indices = @transform_6, window_bounds = array<i64: 1, 32, 2048>}]} {
    %c0 = arith.constant 0 : index
    %c0_0 = arith.constant 0 : index
    %c0_1 = arith.constant 0 : index
    %0 = vector.load %arg1[%c0, %c0_0, %c0_1] : memref<1x32x2048xbf16, #tpu.memory_space<vmem>>, vector<1x32x2048xbf16>
    %1 = vector.shape_cast %0 : vector<1x32x2048xbf16> to vector<32x2048xbf16>
    %c0_2 = arith.constant 0 : index
    %c0_3 = arith.constant 0 : index
    %2 = vector.load %arg3[%c0_2, %c0_3] : memref<16x32xbf16, #tpu.memory_space<vmem>>, vector<16x32xbf16>
    %cst = arith.constant dense<0.000000e+00> : vector<16x2048xf32>
    %3 = tpu.matmul %2, %1, %cst {dimension_numbers = #tpu.dot_dimension_numbers<[1], [0], [0], [1], [0, 0, 1, 1], [], []>} : vector<16x32xbf16>, vector<32x2048xbf16>, vector<16x2048xf32> -> vector<16x2048xf32>
    %c0_4 = arith.constant 0 : index
    %c0_5 = arith.constant 0 : index
    %4 = vector.load %arg4[%c0_4, %c0_5] : memref<16x1xf32, #tpu.memory_space<vmem>>, vector<16x1xf32>
    %5 = vector.broadcast %4 : vector<16x1xf32> to vector<16x2048xf32>
    %6 = arith.addf %3, %5 : vector<16x2048xf32>
    %cst_6 = arith.constant 0.000000e+00 : f32
    %7 = vector.broadcast %cst_6 : f32 to vector<16x2048xf32>
    %8 = arith.cmpf ogt, %6, %7 : vector<16x2048xf32>
    %cst_7 = arith.constant 1.000000e-01 : f32
    %9 = vector.broadcast %cst_7 : f32 to vector<16x2048xf32>
    %10 = arith.mulf %9, %6 : vector<16x2048xf32>
    %11 = arith.select %8, %6, %10 : vector<16x2048xi1>, vector<16x2048xf32>
    %c0_8 = arith.constant 0 : index
    %c0_9 = arith.constant 0 : index
    %12 = vector.load %arg2[%c0_8, %c0_9] : memref<1x2048xf32, #tpu.memory_space<vmem>>, vector<1x2048xf32>
    %13 = vector.broadcast %12 : vector<1x2048xf32> to vector<16x2048xf32>
    %14 = arith.mulf %11, %13 : vector<16x2048xf32>
    %cst_10 = arith.constant 0.000000e+00 : f32
    %15 = vector.broadcast %cst_10 : f32 to vector<16x128xf32>
    %c0_11 = arith.constant 0 : index
    %c0_12 = arith.constant 0 : index
    %16 = vector.load %arg8[%c0_11, %c0_12] : memref<16x2304xf32, #tpu.memory_space<vmem>>, vector<16x128xf32>
    tpu.vector_store %arg8[%c0_11, %c0_12], %15 {strides = array<i32>} : memref<16x2304xf32, #tpu.memory_space<vmem>>, vector<16x128xf32>,
    %cst_13 = arith.constant 0.000000e+00 : f32
    %17 = vector.broadcast %cst_13 : f32 to vector<16x128xf32>
    %c0_14 = arith.constant 0 : index
    %c2176 = arith.constant 2176 : index
    %18 = vector.load %arg8[%c0_14, %c2176] : memref<16x2304xf32, #tpu.memory_space<vmem>>, vector<16x128xf32>
    tpu.vector_store %arg8[%c0_14, %c2176], %17 {strides = array<i32>} : memref<16x2304xf32, #tpu.memory_space<vmem>>, vector<16x128xf32>,
    %c0_15 = arith.constant 0 : index
    %c128 = arith.constant 128 : index
    %19 = vector.load %arg8[%c0_15, %c128] : memref<16x2304xf32, #tpu.memory_space<vmem>>, vector<16x2048xf32>
    tpu.vector_store %arg8[%c0_15, %c128], %14 {strides = array<i32>} : memref<16x2304xf32, #tpu.memory_space<vmem>>, vector<16x2048xf32>,
    %c0_16 = arith.constant 0 : index
    %c0_17 = arith.constant 0 : index
    %20 = vector.load %arg8[%c0_16, %c0_17] : memref<16x2304xf32, #tpu.memory_space<vmem>>, vector<16x2304xf32>
    %21 = vector.extract_strided_slice %20 {offsets = [0, 1], sizes = [16, 2303], strides = [1, 1]} : vector<16x2304xf32> to vector<16x2303xf32>
    %22 = vector.extract_strided_slice %20 {offsets = [0, 0], sizes = [16, 1], strides = [1, 1]} : vector<16x2304xf32> to vector<16x1xf32>
    %23 = tpu.concatenate %21, %22 in 1 : vector<16x2303xf32>, vector<16x1xf32> -> vector<16x2304xf32>
    %24 = vector.extract_strided_slice %20 {offsets = [0, 2303], sizes = [16, 1], strides = [1, 1]} : vector<16x2304xf32> to vector<16x1xf32>
    %25 = vector.extract_strided_slice %20 {offsets = [0, 0], sizes = [16, 2303], strides = [1, 1]} : vector<16x2304xf32> to vector<16x2303xf32>
    %26 = tpu.concatenate %24, %25 in 1 : vector<16x1xf32>, vector<16x2303xf32> -> vector<16x2304xf32>
    %27 = vector.extract_strided_slice %26 {offsets = [0, 0], sizes = [16, 2048], strides = [1, 1]} : vector<16x2304xf32> to vector<16x2048xf32>
    %28 = arith.truncf %27 : vector<16x2048xf32> to vector<16x2048xbf16>
    %c0_18 = arith.constant 0 : index
    %c0_19 = arith.constant 0 : index
    %29 = vector.load %arg9[%c0_18, %c0_19] : memref<144x2048xbf16, #tpu.memory_space<vmem>>, vector<16x2048xbf16>
    tpu.vector_store %arg9[%c0_18, %c0_19], %28 {strides = array<i32>} : memref<144x2048xbf16, #tpu.memory_space<vmem>>, vector<16x2048xbf16>,
    %30 = vector.extract_strided_slice %20 {offsets = [0, 0], sizes = [16, 2048], strides = [1, 1]} : vector<16x2304xf32> to vector<16x2048xf32>
    %31 = arith.truncf %30 : vector<16x2048xf32> to vector<16x2048xbf16>
    %c16 = arith.constant 16 : index
    %c0_20 = arith.constant 0 : index
    %32 = vector.load %arg9[%c16, %c0_20] : memref<144x2048xbf16, #tpu.memory_space<vmem>>, vector<16x2048xbf16>
    tpu.vector_store %arg9[%c16, %c0_20], %31 {strides = array<i32>} : memref<144x2048xbf16, #tpu.memory_space<vmem>>, vector<16x2048xbf16>,
    %33 = vector.extract_strided_slice %23 {offsets = [0, 0], sizes = [16, 2048], strides = [1, 1]} : vector<16x2304xf32> to vector<16x2048xf32>
    %34 = arith.truncf %33 : vector<16x2048xf32> to vector<16x2048xbf16>
    %c32 = arith.constant 32 : index
    %c0_21 = arith.constant 0 : index
    %35 = vector.load %arg9[%c32, %c0_21] : memref<144x2048xbf16, #tpu.memory_space<vmem>>, vector<16x2048xbf16>
    tpu.vector_store %arg9[%c32, %c0_21], %34 {strides = array<i32>} : memref<144x2048xbf16, #tpu.memory_space<vmem>>, vector<16x2048xbf16>,
    %36 = vector.extract_strided_slice %26 {offsets = [0, 128], sizes = [16, 2048], strides = [1, 1]} : vector<16x2304xf32> to vector<16x2048xf32>
    %37 = arith.truncf %36 : vector<16x2048xf32> to vector<16x2048xbf16>
    %c48 = arith.constant 48 : index
    %c0_22 = arith.constant 0 : index
    %38 = vector.load %arg9[%c48, %c0_22] : memref<144x2048xbf16, #tpu.memory_space<vmem>>, vector<16x2048xbf16>
    tpu.vector_store %arg9[%c48, %c0_22], %37 {strides = array<i32>} : memref<144x2048xbf16, #tpu.memory_space<vmem>>, vector<16x2048xbf16>,
    %39 = vector.extract_strided_slice %20 {offsets = [0, 128], sizes = [16, 2048], strides = [1, 1]} : vector<16x2304xf32> to vector<16x2048xf32>
    %40 = arith.truncf %39 : vector<16x2048xf32> to vector<16x2048xbf16>
    %c64 = arith.constant 64 : index
    %c0_23 = arith.constant 0 : index
    %41 = vector.load %arg9[%c64, %c0_23] : memref<144x2048xbf16, #tpu.memory_space<vmem>>, vector<16x2048xbf16>
    tpu.vector_store %arg9[%c64, %c0_23], %40 {strides = array<i32>} : memref<144x2048xbf16, #tpu.memory_space<vmem>>, vector<16x2048xbf16>,
    %42 = vector.extract_strided_slice %23 {offsets = [0, 128], sizes = [16, 2048], strides = [1, 1]} : vector<16x2304xf32> to vector<16x2048xf32>
    %43 = arith.truncf %42 : vector<16x2048xf32> to vector<16x2048xbf16>
    %c80 = arith.constant 80 : index
    %c0_24 = arith.constant 0 : index
    %44 = vector.load %arg9[%c80, %c0_24] : memref<144x2048xbf16, #tpu.memory_space<vmem>>, vector<16x2048xbf16>
    tpu.vector_store %arg9[%c80, %c0_24], %43 {strides = array<i32>} : memref<144x2048xbf16, #tpu.memory_space<vmem>>, vector<16x2048xbf16>,
    %45 = vector.extract_strided_slice %26 {offsets = [0, 256], sizes = [16, 2048], strides = [1, 1]} : vector<16x2304xf32> to vector<16x2048xf32>
    %46 = arith.truncf %45 : vector<16x2048xf32> to vector<16x2048xbf16>
    %c96 = arith.constant 96 : index
    %c0_25 = arith.constant 0 : index
    %47 = vector.load %arg9[%c96, %c0_25] : memref<144x2048xbf16, #tpu.memory_space<vmem>>, vector<16x2048xbf16>
    tpu.vector_store %arg9[%c96, %c0_25], %46 {strides = array<i32>} : memref<144x2048xbf16, #tpu.memory_space<vmem>>, vector<16x2048xbf16>,
    %48 = vector.extract_strided_slice %20 {offsets = [0, 256], sizes = [16, 2048], strides = [1, 1]} : vector<16x2304xf32> to vector<16x2048xf32>
    %49 = arith.truncf %48 : vector<16x2048xf32> to vector<16x2048xbf16>
    %c112 = arith.constant 112 : index
    %c0_26 = arith.constant 0 : index
    %50 = vector.load %arg9[%c112, %c0_26] : memref<144x2048xbf16, #tpu.memory_space<vmem>>, vector<16x2048xbf16>
    tpu.vector_store %arg9[%c112, %c0_26], %49 {strides = array<i32>} : memref<144x2048xbf16, #tpu.memory_space<vmem>>, vector<16x2048xbf16>,
    %51 = vector.extract_strided_slice %23 {offsets = [0, 256], sizes = [16, 2048], strides = [1, 1]} : vector<16x2304xf32> to vector<16x2048xf32>
    %52 = arith.truncf %51 : vector<16x2048xf32> to vector<16x2048xbf16>
    %c128_27 = arith.constant 128 : index
    %c0_28 = arith.constant 0 : index
    %53 = vector.load %arg9[%c128_27, %c0_28] : memref<144x2048xbf16, #tpu.memory_space<vmem>>, vector<16x2048xbf16>
    tpu.vector_store %arg9[%c128_27, %c0_28], %52 {strides = array<i32>} : memref<144x2048xbf16, #tpu.memory_space<vmem>>, vector<16x2048xbf16>,
    %c0_29 = arith.constant 0 : index
    %c0_30 = arith.constant 0 : index
    %54 = vector.load %arg5[%c0_29, %c0_30] : memref<32x144xbf16, #tpu.memory_space<vmem>>, vector<32x144xbf16>
    %c0_31 = arith.constant 0 : index
    %c0_32 = arith.constant 0 : index
    %55 = vector.load %arg9[%c0_31, %c0_32] : memref<144x2048xbf16, #tpu.memory_space<vmem>>, vector<144x2048xbf16>
    %cst_33 = arith.constant dense<0.000000e+00> : vector<32x2048xf32>
    %56 = tpu.matmul %54, %55, %cst_33 {dimension_numbers = #tpu.dot_dimension_numbers<[1], [0], [0], [1], [0, 0, 1, 1], [], []>} : vector<32x144xbf16>, vector<144x2048xbf16>, vector<32x2048xf32> -> vector<32x2048xf32>
    %c0_34 = arith.constant 0 : index
    %c0_35 = arith.constant 0 : index
    %57 = vector.load %arg6[%c0_34, %c0_35] : memref<32x1xf32, #tpu.memory_space<vmem>>, vector<32x1xf32>
    %58 = vector.broadcast %57 : vector<32x1xf32> to vector<32x2048xf32>
    %59 = arith.addf %56, %58 : vector<32x2048xf32>
    %cst_36 = arith.constant 0.000000e+00 : f32
    %60 = vector.broadcast %cst_36 : f32 to vector<32x2048xf32>
    %61 = arith.cmpf ogt, %59, %60 : vector<32x2048xf32>
    %cst_37 = arith.constant 1.000000e-01 : f32
    %62 = vector.broadcast %cst_37 : f32 to vector<32x2048xf32>
    %63 = arith.mulf %62, %59 : vector<32x2048xf32>
    %64 = arith.select %61, %59, %63 : vector<32x2048xi1>, vector<32x2048xf32>
    %65 = arith.extf %1 : vector<32x2048xbf16> to vector<32x2048xf32>
    %66 = arith.addf %65, %64 : vector<32x2048xf32>
    %c0_38 = arith.constant 0 : index
    %c0_39 = arith.constant 0 : index
    %c0_40 = arith.constant 0 : index
    %67 = vector.load %arg7[%c0_38, %c0_39, %c0_40] : memref<1x32x2048xf32, #tpu.memory_space<vmem>>, vector<1x32x2048xf32>
    %68 = vector.shape_cast %67 : vector<1x32x2048xf32> to vector<32x2048xf32>
    %69 = vector.shape_cast %66 : vector<32x2048xf32> to vector<1x32x2048xf32>
    tpu.vector_store %arg7[%c0_38, %c0_39, %c0_40], %69 {strides = array<i32>} : memref<1x32x2048xf32, #tpu.memory_space<vmem>>, vector<1x32x2048xf32>,
    return
  }
  func.func @transform_0(%arg0: i32) -> (i32, i32, i32) {
    %c0_i32 = arith.constant 0 : i32
    %c0_i32_0 = arith.constant 0 : i32
    %c0_i32_1 = arith.constant 0 : i32
    return %arg0, %c0_i32, %c0_i32_0 : i32, i32, i32
  }
  func.func @transform_1(%arg0: i32) -> (i32, i32) {
    %c0_i32 = arith.constant 0 : i32
    %c0_i32_0 = arith.constant 0 : i32
    %c0_i32_1 = arith.constant 0 : i32
    return %c0_i32, %c0_i32_0 : i32, i32
  }
  func.func @transform_2(%arg0: i32) -> (i32, i32) {
    %c0_i32 = arith.constant 0 : i32
    %c0_i32_0 = arith.constant 0 : i32
    %c0_i32_1 = arith.constant 0 : i32
    return %c0_i32, %c0_i32_0 : i32, i32
  }
  func.func @transform_3(%arg0: i32) -> (i32, i32) {
    %c0_i32 = arith.constant 0 : i32
    %c0_i32_0 = arith.constant 0 : i32
    %c0_i32_1 = arith.constant 0 : i32
    return %c0_i32, %c0_i32_0 : i32, i32
  }
  func.func @transform_4(%arg0: i32) -> (i32, i32) {
    %c0_i32 = arith.constant 0 : i32
    %c0_i32_0 = arith.constant 0 : i32
    %c0_i32_1 = arith.constant 0 : i32
    return %c0_i32, %c0_i32_0 : i32, i32
  }
  func.func @transform_5(%arg0: i32) -> (i32, i32) {
    %c0_i32 = arith.constant 0 : i32
    %c0_i32_0 = arith.constant 0 : i32
    %c0_i32_1 = arith.constant 0 : i32
    return %c0_i32, %c0_i32_0 : i32, i32
  }
  func.func @transform_6(%arg0: i32) -> (i32, i32, i32) {
    %c0_i32 = arith.constant 0 : i32
    %c0_i32_0 = arith.constant 0 : i32
    %c0_i32_1 = arith.constant 0 : i32
    return %arg0, %c0_i32, %c0_i32_0 : i32, i32, i32
  }
}

</mosaic_0001>

<bundles_post_ra>
// kernel: tpu_custom_call.1
= control target key start
LH: loop header
LB: loop body
LE: loop exit
PB: predicated region body
PF: predicated region fallthrough
CT: control target
= control target key end

     0   :  { %11 = vsyncpa [#allocation5], 0  ;;  %s4591_s0 = inlined_call_operand.hbm [shape: bf16[2,32,2048], index: 0, kind: input, shape index: {}]   ;;  %s4592_s1 = inlined_call_operand.vmem [shape: f32[1,2048], index: 1, kind: input, shape index: {}]   ;;  %s4593_s2 = inlined_call_operand.vmem [shape: bf16[16,32], index: 2, kind: input, shape index: {}]   ;;  %s4594_s3 = inlined_call_operand.vmem [shape: f32[16,1], index: 3, kind: input, shape index: {}]   ;;  %s4595_s4 = inlined_call_operand.vmem [shape: bf16[32,144], index: 4, kind: input, shape index: {}]   ;;  %s4596_s5 = inlined_call_operand.vmem [shape: f32[32,1], index: 5, kind: input, shape index: {}]   ;;  %s4597_s6 = inlined_call_operand.hbm [shape: f32[2,32,2048], index: 6, kind: output, shape index: {}]  }
   0x1   :  { %13 = vsyncpa [#allocation5 + $0x1], 0 }
   0x2   :  { %14 = vsyncpa [#allocation6], 0 }
   0x3   :  { %16 = vsyncpa [#allocation6 + $0x1], 0  ;;  %s3231_s21 = smov 0   ;;  %s3233_s22 = smov 0  }
   0x4   :  { %s3235_s23 = smov 0   ;;  %s3237_s24 = smov 0  }
   0x5 LB: > { %s3252_s25 = sadd.s32 4294967295, %s3183_s24   ;;  %s2734_s26 = sadd.s32 4294967294, %s3183_s24   ;;  %s3183_s24 = sphi %s3237_s24, %s4610_s24   ;;  %s3179_s23 = sphi %s3235_s23, %s4609_s23   ;;  %s3175_s22 = sphi %s3233_s22, %s4608_s22   ;;  %s3171_s21 = sphi %s3231_s21, %s4607_s21  }
   0x6   : > { %s3256_s27 = sadd.s32 1, %s3183_s24   ;;  %s29_s28 = sadd.s32 1, %s3179_s23 }
   0x7   : > { %s26_s29 = ssub.s32 %s3183_s24, %s3256_s27  ;;  %p36_p0 = scmp.ne.s32.totalorder %s3179_s23, %s3175_s22 }
   0x8   : > { %p27_p1 = scmp.eq.s32.totalorder %s26_s29, 0  ;;  %p37_p2 = scmp.eq.s32.totalorder %s3183_s24, 0 }
   0x9   : > { %p42_p3 = scmp.ne.s32.totalorder %s3175_s22, %s3171_s21  ;;  %p43_p4 = scmp.eq.s32.totalorder %s3252_s25, 0 }
   0xa   : > { %s3268_s30 = scalar_select %p27_p1, %s3179_s23, %s29_s28  }
   0xb   : > { %p3270_p5 = por %p37_p2, %p36_p0  ;;  %p3274_p6 = por %p43_p4, %p42_p3 }
   0xc   : > { %p171_p7 = scmp.eq.s32.totalorder %s3252_s25, 1  ;;  %p177_p8 = scmp.eq.s32.totalorder %s2734_s26, 1 }
   0xd   : > { %p2823_p10 = scmp.lt.s32.totalorder %s3183_s24, 2  ;;  %s212_s11 = sand.u32 1, %s3179_s23  }
   0xe   : > { %p3281_p11 = por %p171_p7, %p36_p0  ;;  %p3285_p12 = por %p177_p8, %p42_p3 }
   0xf   : > { %s2809_s12 = sshll.u32 %s3183_s24, 12  ;;  %s2737_s13 = sshll.u32 %s212_s11, 8 }
  0x10   : > { %s4601_s9 = scalar_select %p3281_p11, 1, 0 }
  0x11   : > { %s4602_s10 = scalar_select %p3285_p12, 1, 0 }
  0x12   : > { %s3294_s16 = scalar_lea.hbm %s4591_s0, %s2809_s12  ;;  %s216_s17 = scalar_lea.vmem [#allocation4], %s2737_s13 }
  0x13   : > { %s223_s18 = sshll.u32 %s216_s17, 4  ;;  %p3298_p13 = pnand %p2823_p10, %p3270_p5  ;;  %s3302_s18 = int_to_ptr.vmem [resolvable:$true] %s223_s18 }
  0x14   : > { %s3304_s20 = scalar_lea.sflag [#allocation5], %s212_s11  ;;  %s3087_s26 = scalar_lea.hbm %s3294_s16, 4096 }
  0x15   : > { %p3088_p0 = scmp.ne.s32.totalorder %s3294_s16, %s3087_s26  ;;  %p3089_p1 = pneg %p3298_p13 }
  0x16   : > { %s3092_s7 = scalar_lea.hbm %s4591_s0, 8192  ;;  %p3093_p4 = scmp.lt.u32.totalorder %s3294_s16, %s4591_s0 }
  0x17   : > { %p3090_p2 = pnand %p3089_p1, %p3088_p0  ;;  %p3094_p5 = scmp.lt.u32.totalorder %s3092_s7, %s3087_s26 }
  0x18   : > { %p3096_p8 = scmp.lt.u32.totalorder %s3087_s26, %s3294_s16 }
  0x19   : > { %p3091_p3 = pneg %p3090_p2  ;;  %p3095_p7 = por %p3094_p5, %p3093_p4 }
  0x1b   : > { %p3097_p10 = por %p3096_p8, %p3095_p7 }
  0x1d   : > { %p3098_p9 = pnand %p3097_p10, %p3091_p3 }
  0x1f   : > { %3101 = shalt.err (!%p3098_p9)
}
  0x20   : > { %s3102_s11 = scalar_lea.vmem %s3302_s18, 4096  ;;  %s3185_s14 = smov [#allocation4]  }
  0x21   : > { %p3103_p0 = scmp.ne.s32.totalorder %s3302_s18, %s3102_s11  ;;  %s3107_s15 = sshll.u32 %s3185_s14, 4  ;;  %s3108_s15 = int_to_ptr.vmem [resolvable:$false] %s3107_s15 }
  0x22   : > { %s3109_s17 = scalar_lea.vmem %s3108_s15, 8192  ;;  %p3110_p11 = scmp.lt.s32.totalorder %s3302_s18, %s3108_s15 }
  0x23   : > { %p3105_p2 = pnand %p3103_p0, %p3089_p1  ;;  %p3111_p4 = scmp.lt.s32.totalorder %s3109_s17, %s3102_s11 }
  0x25   : > { %p3106_p12 = pneg %p3105_p2  ;;  %p3112_p5 = por %p3111_p4, %p3110_p11 }
  0x27   : > { %p3113_p7 = pnand %p3112_p5, %p3106_p12 }
  0x29   : > { %3116 = shalt.err (!%p3113_p7)
}
  0x2a   : > { %s3186_s26 = smov 1024   ;;  %s3187_s28 = smov 64  }
  0x2b   : > { %2818 = dma.hbm_to_vmem [thread:$0]  (!%p3298_p13), %s3294_s16, 4096, %s3302_s18, %s3304_s20, %s3186_s26, %s3186_s26, %s3187_s28  }
  0x2c   : > { %p2740_p9 = scmp.ge.s32.totalorder %s3183_s24, 1  ;;  %p231_p1 = scmp.lt.s32.totalorder %s3183_s24, 3 }
  0x2e   : > { %p232_p3 = pnand %p2740_p9, %p231_p1 }
  0x2f   : > { %s3335_s29 = sand.u32 (!%p232_p3), 1, %s3175_s22  }
  0x30   : > { %235 = sbr.rel (%p232_p3) target bundleno = 826 (0x33a), region = 44  ;;  %s2741_s7 = sshll.u32 (!%p232_p3), %s3335_s29, 8 }
  0x31   : > { %s238_s12 = scalar_lea.sflag (!%p232_p3), [#allocation5], %s3335_s29  ;;  %s3339_s13 = scalar_lea.vmem (!%p232_p3), [#allocation4], %s2741_s7 }
  0x37   : > { %3162 = dma.done.wait (%p3274_p6), %s238_s12, 4096  }
  0x38   : > { %3164 = vsyncadd (%p3274_p6), %s238_s12, 4294963200  ;;  %v3188_v0 = vmov 0   ;;  %v271_v1 = vld [vmem:[%s3339_s13] sm:$0xff]  ;;  %v272_v3 = vld [vmem:[%s3339_s13 + $0x8] sm:$0xff]  ;;  %vm482_vm0 = vcmask 261120   ;;  %s3190_s14 = smov 1  }
  0x39   : > { %518 = vmatprep.mubr.bf16.mxu0 %v3188_v0  ;;  %561 = vmatprep.mubr.bf16.mxu1 %v3188_v0  ;;  %v279_v2 = vld [vmem:[%s3339_s13 + $0x40] sm:$0xff]  ;;  %v280_v5 = vld [vmem:[%s3339_s13 + $0x48] sm:$0xff]  ;;  %v273_v15 = vld [vmem:[%s3339_s13 + $0x10] sm:$0xff]  ;;  %s3191_s7 = smov 127   ;;  %s2742_s18 = sshll.u32 %s3335_s29, 9 }
  0x3a   : > { %2866 = vset.pattern.permute.xlu0 %v3188_v0  ;;  %3047 = vset.pattern.permute.xlu1 %v3188_v0  ;;  %v2745_v4 = vcombine.high %v271_v1, %v279_v2  ;;  %v2744_v6 = vcombine.low %v271_v1, %v279_v2  ;;  %v287_v7 = vld [vmem:[%s3339_s13 + $0x80] sm:$0xff]  ;;  %v2747_v9 = vcombine.high %v272_v3, %v280_v5  ;;  %v288_v12 = vld [vmem:[%s3339_s13 + $0x88] sm:$0xff]  ;;  %v281_v17 = vld [vmem:[%s3339_s13 + $0x50] sm:$0xff]  ;;  %s4229_s19 = scalar_lea.vmem [#allocation7], %s2742_s18  ;;  %s2648_s15 = scalar_lea.sflag [#allocation6], %s3335_s29 }
  0x3b   : > { %v295_v8 = vld [vmem:[%s3339_s13 + $0xc0] sm:$0xff]  ;;  %v2746_v10 = vcombine.low %v272_v3, %v280_v5  ;;  %v296_v13 = vld [vmem:[%s3339_s13 + $0xc8] sm:$0xff]  ;;  %v274_v18 = vld [vmem:[%s3339_s13 + $0x18] sm:$0xff]  ;;  %v2749_v21 = vcombine.high %v273_v15, %v281_v17  ;;  %v2748_v28 = vcombine.low %v273_v15, %v281_v17  ;;  %v3189_v5 = vmov 0.0   ;;  %s2661_s20 = sshll.u32 %s4229_s19, 4  ;;  %p4604_p11 = scmp.ne.s32.totalorder %s4601_s9, 0  ;;  %s4539_s20 = int_to_ptr.vmem [resolvable:$true] %s2661_s20 }
  0x3c   : > { %v2761_v11 = vcombine.high %v287_v7, %v295_v8  ;;  %486 = vmatprep.subr.bf16.mxu0 %v2745_v4  ;;  %v2763_v14 = vcombine.high %v288_v12, %v296_v13  ;;  %529 = vmatprep.subr.bf16.mxu1 %v2747_v9  ;;  %v2760_v16 = vcombine.low %v287_v7, %v295_v8  ;;  %v282_v19 = vld [vmem:[%s3339_s13 + $0x58] sm:$0xff]  ;;  %v289_v23 = vld [vmem:[%s3339_s13 + $0x90] sm:$0xff]  ;;  %v3366_v25 = vld [vmem:[%s4593_s2] sm:$0xff]   ;;  %s3117_s17 = scalar_lea.vmem %s4539_s20, 8192  ;;  %s3193_s26 = smov [#allocation7]  }
  0x3d   : > { %487 = vmatpush1.bf16.msra.mxu0 %v2744_v6  ;;  %530 = vmatpush1.bf16.msra.mxu1 %v2746_v10  ;;  %v2762_v20 = vcombine.low %v288_v12, %v296_v13  ;;  %v2751_v22 = vcombine.high %v274_v18, %v282_v19  ;;  %v297_v24 = vld [vmem:[%s3339_s13 + $0xd0] sm:$0xff]  ;;  %v290_v26 = vld [vmem:[%s3339_s13 + $0x98] sm:$0xff]  ;;  %v2750_v29 = vcombine.low %v274_v18, %v282_v19  ;;  %v275_v32 = vld [vmem:[%s3339_s13 + $0x20] sm:$0xff]  ;;  %v930_v6 = vlaneseq  ;;  %p3118_p6 = scmp.ne.s32.totalorder %s4539_s20, %s3117_s17  ;;  %s3121_s28 = sshll.u32 %s3193_s26, 4  ;;  %s3122_s28 = int_to_ptr.vmem [resolvable:$false] %s3121_s28 }
  0x3e   : > { %488 = vmatprep.subr.bf16.mxu0 %v2761_v11  ;;  %531 = vmatprep.subr.bf16.mxu1 %v2763_v14  ;;  %v298_v27 = vld [vmem:[%s3339_s13 + $0xd8] sm:$0xff]  ;;  %v2765_v30 = vcombine.high %v289_v23, %v297_v24  ;;  %v283_v33 = vld [vmem:[%s3339_s13 + $0x60] sm:$0xff]  ;;  %v276_v34 = vld [vmem:[%s3339_s13 + $0x28] sm:$0xff]  ;;  %v2764_v36 = vcombine.low %v289_v23, %v297_v24  ;;  %p3124_p8 = scmp.lt.s32.totalorder %s4539_s20, %s3122_s28 }
  0x3f   : > { %v2767_v31 = vcombine.high %v290_v26, %v298_v27  ;;  %v284_v35 = vld [vmem:[%s3339_s13 + $0x68] sm:$0xff]  ;;  %v305_v37 = vld [vmem:[%s4594_s3] sm:$0xff]  ;;  %v2766_v38 = vcombine.low %v290_v26, %v298_v27  ;;  %v2753_v39 = vcombine.high %v275_v32, %v283_v33  ;;  %v2752_v45 = vcombine.low %v275_v32, %v283_v33  ;;  %v277_v50 = vld [vmem:[%s3339_s13 + $0x30] sm:$0xff]  ;;  %p3119_p12 = pnand %p3118_p6, %p4604_p11 }
  0x40   : > { %v2755_v40 = vcombine.high %v276_v34, %v284_v35  ;;  %v291_v41 = vld [vmem:[%s3339_s13 + $0xa0] sm:$0xff]  ;;  %v292_v43 = vld [vmem:[%s3339_s13 + $0xa8] sm:$0xff]  ;;  %309 = vperm.xlu0 %2866, %v305_v37   ;;  %v2754_v47 = vcombine.low %v276_v34, %v284_v35  ;;  %v285_v51 = vld [vmem:[%s3339_s13 + $0x70] sm:$0xff]  ;;  %v931_v7 = vshrl.u32 %v930_v6, 7 }
  0x41   : > { %489 = vmatpush1.bf16.msra.mxu0 %v2760_v16  ;;  %532 = vmatpush1.bf16.msra.mxu1 %v2762_v20  ;;  %v299_v42 = vld [vmem:[%s3339_s13 + $0xe0] sm:$0xff]  ;;  %v300_v44 = vld [vmem:[%s3339_s13 + $0xe8] sm:$0xff]  ;;  %v278_v52 = vld [vmem:[%s3339_s13 + $0x38] sm:$0xff]  ;;  %v2757_v56 = vcombine.high %v277_v50, %v285_v51  ;;  %v2756_v62 = vcombine.low %v277_v50, %v285_v51  ;;  %p3120_p13 = pneg %p3119_p12 }
  0x42   : > { %572 = vmatprep.subr.bf16.mxu0 %v2749_v21  ;;  %615 = vmatprep.subr.bf16.mxu1 %v2751_v22  ;;  %v306_v46 = vld [vmem:[%s4594_s3 + $0x8] sm:$0xff]  ;;  %v2769_v48 = vcombine.high %v291_v41, %v299_v42  ;;  %v2771_v49 = vcombine.high %v292_v43, %v300_v44  ;;  %v286_v53 = vld [vmem:[%s3339_s13 + $0x78] sm:$0xff]  ;;  %v2768_v54 = vcombine.low %v291_v41, %v299_v42  ;;  %v293_v58 = vld [vmem:[%s3339_s13 + $0xb0] sm:$0xff]  ;;  %v940_v9 = vsub.s32 2, %v931_v7 }
  0x43   : > { %v2770_v55 = vcombine.low %v292_v43, %v300_v44  ;;  %v2759_v57 = vcombine.high %v278_v52, %v286_v53  ;;  %v301_v59 = vld [vmem:[%s3339_s13 + $0xf0] sm:$0xff]  ;;  %v294_v60 = vld [vmem:[%s3339_s13 + $0xb8] sm:$0xff]  ;;  %v2758_v63 = vcombine.low %v278_v52, %v286_v53  ;;  %v936_v10 = vsub.s32 1, %v931_v7  ;;  %v926_v12 = vld [vmem:[%s4592_s1] sm:$0xff] }
  0x44   : > { %2776 = vmatmul.mubr.msk.bf16.vlgmr.msra.gmra.mrb[0].mxu0 %vm482_vm0, %v3366_v25  ;;  %2777 = vmatmul.mubr.msk.bf16.vlgmr.msra.gmra.mrb[0].mxu1 %vm482_vm0, %v3366_v25  ;;  %v302_v61 = vld [vmem:[%s3339_s13 + $0xf8] sm:$0xff]  ;;  %v2773_v1 = vcombine.high %v293_v58, %v301_v59  ;;  %v2772_v3 = vcombine.low %v293_v58, %v301_v59  ;;  %v932_v11 = vsub.s32 0, %v931_v7  ;;  %v948_v13 = vsub.s32 4, %v931_v7  ;;  %v927_v17 = vld [vmem:[%s4592_s1 + $0x8] sm:$0xff] }
  0x45   : > { %573 = vmatpush1.bf16.msra.mxu0 %v2748_v28  ;;  %616 = vmatpush1.bf16.msra.mxu1 %v2750_v29  ;;  %v2775_v2 = vcombine.high %v294_v60, %v302_v61  ;;  %v2774_v4 = vcombine.low %v294_v60, %v302_v61  ;;  %v956_v14 = vsub.s32 6, %v931_v7  ;;  %v952_v15 = vsub.s32 5, %v931_v7 }
  0x46   : > { %574 = vmatprep.subr.bf16.mxu0 %v2765_v30  ;;  %617 = vmatprep.subr.bf16.mxu1 %v2767_v31  ;;  %v960_v16 = vsub.s32 7, %v931_v7  ;;  %v3424_v18 = vrot.slane %v926_v12, %v940_v9  ;;  %v3426_v19 = vrot.slane %v926_v12, %v936_v10  ;;  %v3430_v21 = vrot.slane %v926_v12, %v932_v11 }
  0x47   : > { %604 = vmatprep.mubr.bf16.mxu0 %v3188_v0  ;;  %647 = vmatprep.mubr.bf16.mxu1 %v3188_v0  ;;  %v3432_v22 = vrot.slane %v926_v12, %v948_v13  ;;  %v3434_v23 = vrot.slane %v926_v12, %v956_v14  ;;  %v3436_v24 = vrot.slane %v926_v12, %v952_v15 }
  0x48   : > { %314 = vperm.xlu0 %2866, %v306_v46   ;;  %v3442_v28 = vrot.slane %v927_v17, %v932_v11  ;;  %v3444_v29 = vrot.slane %v927_v17, %v940_v9  ;;  %v3446_v30 = vrot.slane %v927_v17, %v936_v10  ;;  %v3451_v35 = vrot.slane %v927_v17, %v948_v13 }
  0x49   : > { %575 = vmatpush1.bf16.msra.mxu0 %v2764_v36  ;;  %618 = vmatpush1.bf16.msra.mxu1 %v2766_v38  ;;  %v3453_v36 = vrot.slane %v927_v17, %v956_v14  ;;  %v3455_v37 = vrot.slane %v927_v17, %v952_v15  ;;  %v3459_v42 = vrot.slane %v927_v17, %v960_v16 }
  0x4a   : > { %658 = vmatprep.subr.bf16.mxu0 %v2753_v39  ;;  %701 = vmatprep.subr.bf16.mxu1 %v2755_v40 }
  0x4c   : > { %2778 = vmatmul.mubr.msk.bf16.vlgmr.msra.gmra.mrb[4].mxu0 %vm482_vm0, %v3366_v25  ;;  %2779 = vmatmul.mubr.msk.bf16.vlgmr.msra.gmra.mrb[4].mxu1 %vm482_vm0, %v3366_v25 }
  0x4d   : > { %659 = vmatpush1.bf16.msra.mxu0 %v2752_v45  ;;  %702 = vmatpush1.bf16.msra.mxu1 %v2754_v47 }
  0x4e   : > { %660 = vmatprep.subr.bf16.mxu0 %v2769_v48  ;;  %703 = vmatprep.subr.bf16.mxu1 %v2771_v49 }
  0x4f   : > { %690 = vmatprep.mubr.bf16.mxu0 %v3188_v0  ;;  %733 = vmatprep.mubr.bf16.mxu1 %v3188_v0 }
  0x50   : > { %2868 = vrot.lane.b32.xlu0 %v3189_v5, %s3190_s14 }
  0x51   : > { %661 = vmatpush1.bf16.msra.mxu0 %v2768_v54  ;;  %704 = vmatpush1.bf16.msra.mxu1 %v2770_v55 }
  0x52   : > { %744 = vmatprep.subr.bf16.mxu0 %v2757_v56  ;;  %787 = vmatprep.subr.bf16.mxu1 %v2759_v57 }
  0x54   : > { %2780 = vmatmul.mubr.msk.bf16.vlgmr.msra.gmra.mrb[8].mxu0 %vm482_vm0, %v3366_v25  ;;  %2781 = vmatmul.mubr.msk.bf16.vlgmr.msra.gmra.mrb[8].mxu1 %vm482_vm0, %v3366_v25 }
  0x55   : > { %745 = vmatpush1.bf16.msra.mxu0 %v2756_v62  ;;  %788 = vmatpush1.bf16.msra.mxu1 %v2758_v63 }
  0x56   : > { %746 = vmatprep.subr.bf16.mxu0 %v2773_v1  ;;  %789 = vmatprep.subr.bf16.mxu1 %v2775_v2 }
  0x57   : > { %776 = vmatprep.mubr.bf16.mxu0 %v3188_v0  ;;  %819 = vmatprep.mubr.bf16.mxu1 %v3188_v0  ;;  %v944_v0 = vsub.s32 3, %v931_v7 }
  0x59   : > { %747 = vmatpush1.bf16.msra.mxu0 %v2772_v3  ;;  %790 = vmatpush1.bf16.msra.mxu1 %v2774_v4  ;;  %v3428_v20 = vrot.slane %v926_v12, %v944_v0  ;;  %v3448_v31 = vrot.slane %v927_v17, %v944_v0 }
  0x5c   : > { %2782 = vmatmul.mubr.msk.bf16.vlgmr.msra.gmra.mrb[12].mxu0 %vm482_vm0, %v3366_v25  ;;  %2783 = vmatmul.mubr.msk.bf16.vlgmr.msra.gmra.mrb[12].mxu1 %vm482_vm0, %v3366_v25  ;;  %v3438_v25 = vrot.slane %v926_v12, %v960_v16 }
  0xbf   : > { %v3416_v8 = vpop.permute.xlu0 %309 }
  0xc7   : > { %v3440_v26 = vpop.permute.xlu0 %314 }
 0x117   : > { %v520_v27 = vpop.f32.mrb[0].mxu0  ;;  %v563_v33 = vpop.f32.mrb[0].mxu1 }
 0x118   : > { %v521_v32 = vadd.f32 %v520_v27, %v3416_v8  ;;  %v522_v34 = vpop.f32.mrb[1].mxu0  ;;  %v564_v38 = vadd.f32 %v563_v33, %v3416_v8  ;;  %v565_v40 = vpop.f32.mrb[1].mxu1 }
 0x119   : > { %v523_v39 = vadd.f32 %v522_v34, %v3416_v8  ;;  %v524_v41 = vpop.f32.mrb[2].mxu0  ;;  %v566_v44 = vadd.f32 %v565_v40, %v3416_v8  ;;  %v567_v46 = vpop.f32.mrb[2].mxu1 }
 0x11a   : > { %vm830_vm1 = vcmp.gt.f32.partialorder %v521_v32, 0.0  ;;  %v862_v43 = vmul.f32 0.1, %v521_v32  ;;  %v525_v45 = vadd.f32 %v524_v41, %v3440_v26  ;;  %v526_v47 = vpop.f32.mrb[3].mxu0  ;;  %vm832_vm2 = vcmp.gt.f32.partialorder %v564_v38, 0.0  ;;  %v569_v52 = vpop.f32.mrb[3].mxu1 }
 0x11b   : > { %v864_v48 = vmul.f32 0.1, %v564_v38  ;;  %vm831_vm3 = vcmp.gt.f32.partialorder %v523_v39, 0.0  ;;  %v863_v49 = vmul.f32 0.1, %v523_v39  ;;  %vm833_vm4 = vcmp.gt.f32.partialorder %v566_v44, 0.0 }
 0x11c   : > { %v3463_v50 = vsel %vm830_vm1, %v521_v32, %v862_v43  ;;  %v865_v51 = vmul.f32 0.1, %v566_v44  ;;  %vm846_vm5 = vcmp.gt.f32.partialorder %v525_v45, 0.0  ;;  %v878_v55 = vmul.f32 0.1, %v525_v45 }
 0x11d   : > { %v896_v53 = vsel %vm832_vm2, %v564_v38, %v864_v48  ;;  %v895_v54 = vsel %vm831_vm3, %v523_v39, %v863_v49  ;;  %v568_v56 = vadd.f32 %v567_v46, %v3440_v26  ;;  %v527_v60 = vadd.f32 %v526_v47, %v3440_v26 }
 0x11e   : > { %v3467_v57 = vmul.f32 %v3424_v18, %v896_v53  ;;  %v3470_v58 = vmul.f32 %v3426_v19, %v895_v54  ;;  %v897_v59 = vsel %vm833_vm4, %v566_v44, %v865_v51  ;;  %v910_v62 = vsel %vm846_vm5, %v525_v45, %v878_v55 }
 0x11f   : > { %v3474_v61 = vmul.f32 %v3428_v20, %v897_v59  ;;  %vm848_vm6 = vcmp.gt.f32.partialorder %v568_v56, 0.0  ;;  %v880_v63 = vmul.f32 0.1, %v568_v56  ;;  %v606_v1 = vpop.f32.mrb[4].mxu0  ;;  %v3477_v2 = vmul.f32 %v3430_v21, %v910_v62  ;;  %v649_v6 = vpop.f32.mrb[4].mxu1 }
 0x120   : > { %vm847_vm7 = vcmp.gt.f32.partialorder %v527_v60, 0.0  ;;  %v879_v3 = vmul.f32 0.1, %v527_v60  ;;  %v570_v4 = vadd.f32 %v569_v52, %v3440_v26  ;;  %v608_v7 = vpop.f32.mrb[5].mxu0  ;;  %v607_v10 = vadd.f32 %v606_v1, %v3416_v8  ;;  %v651_v12 = vpop.f32.mrb[5].mxu1 }
 0x121   : > { %v912_v9 = vsel %vm848_vm6, %v568_v56, %v880_v63  ;;  %v650_v0 = vadd.f32 %v649_v6, %v3416_v8  ;;  %v609_v11 = vadd.f32 %v608_v7, %v3416_v8  ;;  %v610_v13 = vpop.f32.mrb[6].mxu0  ;;  %v653_v17 = vpop.f32.mrb[6].mxu1  ;;  %v652_v43 = vadd.f32 %v651_v12, %v3416_v8 }
 0x122   : > { %v3484_v14 = vmul.f32 %v3424_v18, %v912_v9  ;;  %v911_v15 = vsel %vm847_vm7, %v527_v60, %v879_v3  ;;  %vm849_vm8 = vcmp.gt.f32.partialorder %v570_v4, 0.0  ;;  %v881_v16 = vmul.f32 0.1, %v570_v4  ;;  %v612_v27 = vpop.f32.mrb[7].mxu0  ;;  %v655_v34 = vpop.f32.mrb[7].mxu1 }
 0x123   : > { %v3487_v32 = vmul.f32 %v3426_v19, %v911_v15  ;;  %vm834_vm9 = vcmp.gt.f32.partialorder %v607_v10, 0.0  ;;  %v866_v33 = vmul.f32 0.1, %v607_v10  ;;  %vm836_vm10 = vcmp.gt.f32.partialorder %v650_v0, 0.0 }
 0x124   : > { %v913_v38 = vsel %vm849_vm8, %v570_v4, %v881_v16  ;;  %v868_v39 = vmul.f32 0.1, %v650_v0  ;;  %vm835_vm11 = vcmp.gt.f32.partialorder %v609_v11, 0.0  ;;  %v867_v40 = vmul.f32 0.1, %v609_v11 }
 0x125   : > { %v3490_v41 = vmul.f32 %v3428_v20, %v913_v38  ;;  %v898_v18 = vsel %vm834_vm9, %v607_v10, %v866_v33  ;;  %v611_v44 = vadd.f32 %v610_v13, %v3440_v26  ;;  %v654_v47 = vadd.f32 %v653_v17, %v3440_v26 }
 0x126   : > { %v3495_v45 = vmul.f32 %v3432_v22, %v898_v18  ;;  %v900_v19 = vsel %vm836_vm10, %v650_v0, %v868_v39  ;;  %v899_v46 = vsel %vm835_vm11, %v609_v11, %v867_v40  ;;  %vm837_vm12 = vcmp.gt.f32.partialorder %v652_v43, 0.0 }
 0x127   : > { %v3499_v48 = vmul.f32 %v3434_v23, %v900_v19  ;;  %v3502_v49 = vmul.f32 %v3436_v24, %v899_v46  ;;  %v869_v20 = vmul.f32 0.1, %v652_v43  ;;  %v692_v51 = vpop.f32.mrb[8].mxu0  ;;  %vm850_vm13 = vcmp.gt.f32.partialorder %v611_v44, 0.0  ;;  %v735_v60 = vpop.f32.mrb[8].mxu1 }
 0x128   : > { %v882_v52 = vmul.f32 0.1, %v611_v44  ;;  %vm852_vm14 = vcmp.gt.f32.partialorder %v654_v47, 0.0  ;;  %v884_v53 = vmul.f32 0.1, %v654_v47  ;;  %v3506_v55 = vmul.f32 %v3430_v21, %v3463_v50  ;;  %v694_v62 = vpop.f32.mrb[9].mxu0 }
 0x129   : > { %v901_v54 = vsel %vm837_vm12, %v652_v43, %v869_v20  ;;  %v613_v56 = vadd.f32 %v612_v27, %v3440_v26  ;;  %v656_v59 = vadd.f32 %v655_v34, %v3440_v26  ;;  %v2882_v4 = vpack.i.bf16 %v3477_v2, %v3189_v5  ;;  %v737_v6 = vpop.f32.mrb[9].mxu1  ;;  %v696_v7 = vpop.f32.mrb[10].mxu0 }
 0x12a   : > { %v3511_v63 = vmul.f32 %v3438_v25, %v901_v54  ;;  %v914_v1 = vsel %vm850_vm13, %v611_v44, %v882_v52  ;;  %v916_v3 = vsel %vm852_vm14, %v654_v47, %v884_v53  ;;  %v2872_v50 = vpack.i.bf16 %v3506_v55, %v3189_v5  ;;  %v739_v10 = vpop.f32.mrb[10].mxu1  ;;  %v698_v0 = vpop.f32.mrb[11].mxu0 }
 0x12b   : > { %v3516_v9 = vmul.f32 %v3432_v22, %v914_v1  ;;  %v3519_v21 = vmul.f32 %v3434_v23, %v916_v3  ;;  %vm851_vm15 = vcmp.gt.f32.partialorder %v613_v56, 0.0  ;;  %v883_v11 = vmul.f32 0.1, %v613_v56  ;;  %2883 = vrot.lane.b32.xlu0 %v2882_v4, %s3190_s14  ;;  %v741_v15 = vpop.f32.mrb[11].mxu1 }
 0x12c   : > { %vm853_vm0 = vcmp.gt.f32.partialorder %v656_v59, 0.0  ;;  %v885_v12 = vmul.f32 0.1, %v656_v59  ;;  %v2877_v13 = vpack.i.bf16 %v3467_v57, %v3470_v58  ;;  %2873 = vrot.lane.b32.xlu1 %v2872_v50, %s3190_s14  ;;  %v693_v22 = vadd.f32 %v692_v51, %v3416_v8 }
 0x12d   : > { %v736_v23 = vadd.f32 %v735_v60, %v3416_v8  ;;  %v2897_v16 = vpack.i.bf16 %v3474_v61, %v3467_v57  ;;  %v695_v17 = vadd.f32 %v694_v62, %v3416_v8  ;;  %v915_v27 = vsel %vm851_vm15, %v613_v56, %v883_v11 }
 0x12e   : > { %v917_v33 = vsel %vm853_vm0, %v656_v59, %v885_v12  ;;  %v738_v34 = vadd.f32 %v737_v6, %v3416_v8  ;;  %v697_v38 = vadd.f32 %v696_v7, %v3440_v26  ;;  %v3535_v39 = vmul.f32 %v3436_v24, %v915_v27 }
 0x12f   : > { %v3538_v40 = vmul.f32 %v3438_v25, %v917_v33  ;;  %vm838_vm1 = vcmp.gt.f32.partialorder %v693_v22, 0.0  ;;  %v870_v18 = vmul.f32 0.1, %v693_v22  ;;  %v778_v43 = vpop.f32.mrb[12].mxu0  ;;  %vm840_vm2 = vcmp.gt.f32.partialorder %v736_v23, 0.0  ;;  %2898 = vrot.lane.b32.xlu0 %v2897_v16, %s3191_s7  ;;  %v821_v24 = vpop.f32.mrb[12].mxu1 }
 0x130   : > { %v872_v44 = vmul.f32 0.1, %v736_v23  ;;  %vm839_vm3 = vcmp.gt.f32.partialorder %v695_v17, 0.0  ;;  %v871_v19 = vmul.f32 0.1, %v695_v17  ;;  %2878 = vrot.lane.b32.xlu1 %v2877_v13, %s3190_s14  ;;  %vm841_vm4 = vcmp.gt.f32.partialorder %v738_v34, 0.0 }
 0x131   : > { %v902_v46 = vsel %vm838_vm1, %v693_v22, %v870_v18  ;;  %v873_v47 = vmul.f32 0.1, %v738_v34  ;;  %vm854_vm5 = vcmp.gt.f32.partialorder %v697_v38, 0.0  ;;  %v780_v20 = vpop.f32.mrb[13].mxu0  ;;  %v886_v53 = vmul.f32 0.1, %v697_v38 }
 0x132   : > { %v3543_v25 = vmul.f32 %v3442_v28, %v902_v46  ;;  %v904_v51 = vsel %vm840_vm2, %v736_v23, %v872_v44  ;;  %v903_v52 = vsel %vm839_vm3, %v695_v17, %v871_v19  ;;  %v823_v54 = vpop.f32.mrb[13].mxu1  ;;  %v782_v56 = vpop.f32.mrb[14].mxu0  ;;  %v740_v1 = vadd.f32 %v739_v10, %v3440_v26 }
 0x133   : > { %v3546_v59 = vmul.f32 %v3444_v29, %v904_v51  ;;  %v3549_v60 = vmul.f32 %v3446_v30, %v903_v52  ;;  %v905_v62 = vsel %vm841_vm4, %v738_v34, %v873_v47  ;;  %v825_v3 = vpop.f32.mrb[14].mxu1  ;;  %v784_v4 = vpop.f32.mrb[15].mxu0  ;;  %v918_v7 = vsel %vm854_vm5, %v697_v38, %v886_v53 }
 0x134   : > { %v3553_v6 = vmul.f32 %v3448_v31, %v905_v62  ;;  %v2887_v50 = vpack.i.bf16 %v3484_v14, %v3487_v32  ;;  %v699_v11 = vadd.f32 %v698_v0, %v3440_v26  ;;  %v827_v12 = vpop.f32.mrb[15].mxu1  ;;  %v3560_v13 = vmul.f32 %v3442_v28, %v918_v7 }
 0x135   : > { %vm856_vm6 = vcmp.gt.f32.partialorder %v740_v1, 0.0  ;;  %v888_v22 = vmul.f32 0.1, %v740_v1  ;;  %v742_v10 = vadd.f32 %v741_v15, %v3440_v26  ;;  %v2912_v16 = vpack.i.bf16 %v3490_v41, %v3484_v14 }
 0x136   : > { %2888 = vrot.lane.b32.xlu1 %v2887_v50, %s3190_s14  ;;  %vm855_vm7 = vcmp.gt.f32.partialorder %v699_v11, 0.0  ;;  %v887_v23 = vmul.f32 0.1, %v699_v11  ;;  %v2892_v17 = vpack.i.bf16 %v3470_v58, %v3506_v55  ;;  %v779_v28 = vadd.f32 %v778_v43, %v3416_v8 }
 0x137   : > { %v920_v27 = vsel %vm856_vm6, %v740_v1, %v888_v22  ;;  %vm857_vm8 = vcmp.gt.f32.partialorder %v742_v10, 0.0  ;;  %v889_v0 = vmul.f32 0.1, %v742_v10  ;;  %2913 = vrot.lane.b32.xlu0 %v2912_v16, %s3191_s7  ;;  %v822_v15 = vadd.f32 %v821_v24, %v3416_v8 }
 0x138   : > { %v3570_v33 = vmul.f32 %v3444_v29, %v920_v27  ;;  %v919_v34 = vsel %vm855_vm7, %v699_v11, %v887_v23  ;;  %v2917_v38 = vpack.i.bf16 %v3490_v41, %v3474_v61  ;;  %vm842_vm9 = vcmp.gt.f32.partialorder %v779_v28, 0.0 }
 0x139   : > { %v3577_v18 = vmul.f32 %v3446_v30, %v919_v34  ;;  %v921_v44 = vsel %vm857_vm8, %v742_v10, %v889_v0  ;;  %v874_v19 = vmul.f32 0.1, %v779_v28  ;;  %vm844_vm10 = vcmp.gt.f32.partialorder %v822_v15, 0.0 }
 0x13a   : > { %v3580_v46 = vmul.f32 %v3448_v31, %v921_v44  ;;  %2893 = vrot.lane.b32.xlu1 %v2892_v17, %s3191_s7  ;;  %v876_v29 = vmul.f32 0.1, %v822_v15  ;;  %v781_v43 = vadd.f32 %v780_v20, %v3416_v8  ;;  %v824_v24 = vadd.f32 %v823_v54, %v3416_v8 }
 0x13b   : > { %v906_v47 = vsel %vm842_vm9, %v779_v28, %v874_v19  ;;  %v783_v51 = vadd.f32 %v782_v56, %v3440_v26  ;;  %v826_v30 = vadd.f32 %v825_v3, %v3440_v26  ;;  %2918 = vrot.lane.b32.xlu0 %v2917_v38, %s3190_s14  ;;  %v2902_v7 = vpack.i.bf16 %v3487_v32, %v3477_v2 }
 0x13c   : > { %v3588_v52 = vmul.f32 %v3451_v35, %v906_v47  ;;  %v908_v53 = vsel %vm844_vm10, %v822_v15, %v876_v29  ;;  %vm843_vm11 = vcmp.gt.f32.partialorder %v781_v43, 0.0  ;;  %v875_v31 = vmul.f32 0.1, %v781_v43 }
 0x13d   : > { %v3592_v62 = vmul.f32 %v3453_v36, %v908_v53  ;;  %vm845_vm12 = vcmp.gt.f32.partialorder %v824_v24, 0.0  ;;  %v877_v20 = vmul.f32 0.1, %v824_v24  ;;  %vm858_vm13 = vcmp.gt.f32.partialorder %v783_v51, 0.0 }
 0x13e   : > { %v907_v1 = vsel %vm843_vm11, %v781_v43, %v875_v31  ;;  %v890_v8 = vmul.f32 0.1, %v783_v51  ;;  %vm860_vm14 = vcmp.gt.f32.partialorder %v826_v30, 0.0  ;;  %v892_v54 = vmul.f32 0.1, %v826_v30  ;;  %2903 = vrot.lane.b32.xlu1 %v2902_v7, %s3191_s7 }
 0x13f   : > { %v3595_v56 = vmul.f32 %v3455_v37, %v907_v1  ;;  %v909_v3 = vsel %vm845_vm12, %v824_v24, %v877_v20  ;;  %v785_v50 = vadd.f32 %v784_v4, %v3440_v26  ;;  %v828_v23 = vadd.f32 %v827_v12, %v3440_v26 }
 0x140   : > { %v3601_v11 = vmul.f32 %v3459_v42, %v909_v3  ;;  %v922_v22 = vsel %vm858_vm13, %v783_v51, %v890_v8  ;;  %v924_v10 = vsel %vm860_vm14, %v826_v30, %v892_v54  ;;  %v2927_v4 = vpack.i.bf16 %v3516_v9, %v3495_v45 }
 0x141   : > { %v1038_v16 = vmul.f32 %v3451_v35, %v922_v22  ;;  %v3606_v17 = vmul.f32 %v3453_v36, %v924_v10  ;;  %vm859_vm15 = vcmp.gt.f32.partialorder %v785_v50, 0.0  ;;  %v891_v27 = vmul.f32 0.1, %v785_v50 }
 0x142   : > { %vm861_vm0 = vcmp.gt.f32.partialorder %v828_v23, 0.0  ;;  %v893_v0 = vmul.f32 0.1, %v828_v23  ;;  %v2932_v28 = vpack.i.bf16 %v3499_v48, %v3502_v49  ;;  %v2947_v26 = vpack.i.bf16 %v3511_v63, %v3499_v48  ;;  %2928 = vrot.lane.b32.xlu0 %v2927_v4, %s3190_s14  ;;  %2908 = vrot.lane.b32.xlu1 %v3189_v5, %s3191_s7 }
 0x143   : > { %v923_v34 = vsel %vm859_vm15, %v785_v50, %v891_v27  ;;  %v2937_v35 = vpack.i.bf16 %v3535_v39, %v3502_v49  ;;  %v2957_v15 = vpack.i.bf16 %v3538_v40, %v3511_v63  ;;  %v2942_v38 = vpack.i.bf16 %v3519_v21, %v3535_v39 }
 0x144   : > { %v3618_v36 = vmul.f32 %v3455_v37, %v923_v34  ;;  %v925_v12 = vsel %vm861_vm0, %v828_v23, %v893_v0  ;;  %v2967_v19 = vpack.i.bf16 %v3560_v13, %v3543_v25  ;;  %v2952_v37 = vpack.i.bf16 %v3538_v40, %v3519_v21 }
 0x145   : > { %v1041_v44 = vmul.f32 %v3459_v42, %v925_v12  ;;  %v2972_v29 = vpack.i.bf16 %v3546_v59, %v3549_v60  ;;  %v2987_v43 = vpack.i.bf16 %v3553_v6, %v3546_v59  ;;  %v2977_v47 = vpack.i.bf16 %v3577_v18, %v3549_v60  ;;  %v1791_v12 = vld [vmem:[%s4596_s5 + $0x8] sm:$0xff] }
 0x146   : > { %v2997_v42 = vpack.i.bf16 %v3580_v46, %v3553_v6  ;;  %v2982_v24 = vpack.i.bf16 %v3570_v33, %v3577_v18  ;;  %v3007_v51 = vpack.i.bf16 %v1038_v16, %v3588_v52  ;;  %v2992_v30 = vpack.i.bf16 %v3580_v46, %v3570_v33  ;;  %2933 = vrot.lane.b32.xlu0 %v2932_v28, %s3190_s14 }
 0x147   : > { %v3012_v53 = vpack.i.bf16 %v3592_v62, %v3595_v56  ;;  %v3027_v31 = vpack.i.bf16 %v3601_v11, %v3592_v62  ;;  %v3017_v20 = vpack.i.bf16 %v3618_v36, %v3595_v56  ;;  %v3037_v1 = vpack.i.bf16 %v1041_v44, %v3601_v11  ;;  %2923 = vrot.lane.b32.xlu1 %v2927_v4, %s3191_s7 }
 0x148   : > { %v3022_v8 = vpack.i.bf16 %v3606_v17, %v3618_v36  ;;  %v3032_v54 = vpack.i.bf16 %v1041_v44, %v3606_v17  ;;  %v3659_v3 = vpack.c.bf16 %v3477_v2, %v3506_v55  ;;  %v3663_v7 = vpack.c.bf16 %v3484_v14, %v3467_v57 }
 0x149   : > { %v3667_v50 = vpack.c.bf16 %v3487_v32, %v3470_v58  ;;  %v3671_v22 = vpack.c.bf16 %v3490_v41, %v3474_v61  ;;  %v3675_v10 = vpack.c.bf16 %v3516_v9, %v3495_v45  ;;  %v3679_v2 = vpack.c.bf16 %v3519_v21, %v3499_v48  ;;  %v1790_v9 = vld [vmem:[%s4596_s5] sm:$0xff]  ;;  %v1792_v21 = vld [vmem:[%s4596_s5 + $0x10] sm:$0xff] }
 0x14a   : > { %v3683_v57 = vpack.c.bf16 %v3535_v39, %v3502_v49  ;;  %v3687_v58 = vpack.c.bf16 %v3538_v40, %v3511_v63  ;;  %2948 = vrot.lane.b32.xlu0 %v2947_v26, %s3191_s7  ;;  %v3692_v61 = vpack.c.bf16 %v3560_v13, %v3543_v25  ;;  %v3696_v14 = vpack.c.bf16 %v3570_v33, %v3546_v59  ;;  %v3728_v63 = vld [vmem:[%s4595_s4 + $0x4] ss:$8 sps:$4 sm:$0xff]   ;;  %v3757_v39 = vpop.permute.xlu0 %2868 }
 0x14b   : > { %v3700_v32 = vpack.c.bf16 %v3577_v18, %v3549_v60  ;;  %v3704_v41 = vpack.c.bf16 %v3580_v46, %v3553_v6  ;;  %2938 = vrot.lane.b32.xlu1 %v2937_v35, %s3191_s7  ;;  %v3708_v45 = vpack.c.bf16 %v1038_v16, %v3588_v52  ;;  %v3712_v48 = vpack.c.bf16 %v3606_v17, %v3592_v62 }
 0x14c   : > { %v3716_v49 = vpack.c.bf16 %v3618_v36, %v3595_v56  ;;  %v3719_v55 = vpack.c.bf16 %v1041_v44, %v3601_v11  ;;  %vm1832_vm1 = vcmask 130048   ;;  %v2871_v40 = vunpack.i.h.bf16 %v3757_v39 }
 0x14d   : > { %2790 = vmatprep.mubr.msk.bf16.mxu1 %vm1832_vm1, %v3728_v63  ;;  %2788 = vmatprep.mubr.msk.bf16.mxu0 %vm1832_vm1, %v3728_v63  ;;  %v2870_v25 = vunpack.i.l.bf16 %v3757_v39  ;;  %vm1371_vm2 = vcmask 7168   ;;  %v3192_v36 = vmov 0.0|0.0   ;;  %vm1222_vm3 = vcmask 1039360   ;;  %v3057_v39 = vld [vmem:[%s3339_s13 + $0x8] sm:$0xff] }
 0x14e   : > { %2958 = vrot.lane.b32.xlu0 %v2957_v15, %s3190_s14 }
 0x14f   : > { %2943 = vrot.lane.b32.xlu1 %v2942_v38, %s3190_s14 }
 0x152   : > { %2968 = vrot.lane.b32.xlu0 %v2967_v19, %s3190_s14 }
 0x153   : > { %2953 = vrot.lane.b32.xlu1 %v2952_v37, %s3191_s7 }
 0x156   : > { %2973 = vrot.lane.b32.xlu0 %v2972_v29, %s3190_s14 }
 0x157   : > { %2963 = vrot.lane.b32.xlu1 %v2967_v19, %s3191_s7 }
 0x15a   : > { %2988 = vrot.lane.b32.xlu0 %v2987_v43, %s3191_s7 }
 0x15b   : > { %2978 = vrot.lane.b32.xlu1 %v2977_v47, %s3191_s7 }
 0x15e   : > { %2998 = vrot.lane.b32.xlu0 %v2997_v42, %s3190_s14 }
 0x15f   : > { %2983 = vrot.lane.b32.xlu1 %v2982_v24, %s3190_s14 }
 0x162   : > { %3008 = vrot.lane.b32.xlu0 %v3007_v51, %s3190_s14 }
 0x163   : > { %2993 = vrot.lane.b32.xlu1 %v2992_v30, %s3191_s7 }
 0x166   : > { %3013 = vrot.lane.b32.xlu0 %v3012_v53, %s3190_s14 }
 0x167   : > { %3003 = vrot.lane.b32.xlu1 %v3007_v51, %s3191_s7 }
 0x16a   : > { %3028 = vrot.lane.b32.xlu0 %v3027_v31, %s3191_s7 }
 0x16b   : > { %3018 = vrot.lane.b32.xlu1 %v3017_v20, %s3191_s7 }
 0x16e   : > { %3038 = vrot.lane.b32.xlu0 %v3037_v1, %s3190_s14 }
 0x16f   : > { %3023 = vrot.lane.b32.xlu1 %v3022_v8, %s3190_s14 }
 0x172   : > { %1796 = vperm.xlu0 %2866, %v1790_v9  }
 0x173   : > { %3033 = vrot.lane.b32.xlu1 %v3032_v54, %s3191_s7 }
 0x176   : > { %1806 = vperm.xlu0 %2866, %v1792_v21  }
 0x177   : > { %3043 = vrot.lane.b32.xlu1 %v3189_v5, %s3191_s7  ;;  %s3123_s7 = scalar_lea.vmem %s3122_s28, 16384 }
 0x178   : > { %p3125_p10 = scmp.lt.s32.totalorder %s3123_s7, %s3117_s17 }
 0x17a   : > { %p3126_p0 = por %p3125_p10, %p3124_p8 }
 0x17b   : > { %1801 = vperm.xlu1 %3047, %v1791_v12  }
 0x17c   : > { %p3127_p2 = pnand %p3126_p0, %p3120_p13 }
 0x19d   : > { %v2884_v59 = vpop.permute.xlu0 %2883 }
 0x19e   : > { %v2874_v60 = vpop.permute.xlu1 %2873  ;;  %v2886_v6 = vunpack.i.h.bf16 %v2884_v59  ;;  %v2885_v13 = vunpack.i.l.bf16 %v2884_v59 }
 0x19f   : > { %v2876_v33 = vunpack.i.h.bf16 %v2874_v60  ;;  %v2875_v18 = vunpack.i.l.bf16 %v2874_v60 }
 0x1a0   : > { %v1443_v46 = vsel %vm1371_vm2, %v2871_v40, %v2885_v13  ;;  %v1389_v52 = vsel %vm1371_vm2, %v2885_v13, %v2886_v6 }
 0x1a1   : > { %v1442_v5 = vsel %vm1371_vm2, %v2870_v25, %v2875_v18  ;;  %v1372_v62 = vsel %vm1371_vm2, %v2875_v18, %v2876_v33  ;;  %v3771_v16 = vpop.permute.xlu0 %2898 }
 0x1a2   : > { %v1444_v56 = vpack.c.bf16 %v1443_v46, %v1442_v5  ;;  %v2879_v11 = vpop.permute.xlu1 %2878  ;;  %v3769_v23 = vpack.c.bf16 %v1389_v52, %v1372_v62  ;;  %v2901_v43 = vunpack.i.h.bf16 %v3771_v16  ;;  %v2900_v47 = vunpack.i.l.bf16 %v3771_v16 }
 0x1a3   : > { %v2881_v17 = vunpack.i.h.bf16 %v2879_v11  ;;  %v2880_v27 = vunpack.i.l.bf16 %v2879_v11 }
 0x1a4   : > { %1839 = vmatprep.subr.bf16.mxu0 %v3769_v23  ;;  %v1226_v31 = vsel %vm1222_vm3, %v2900_v47, %v2901_v43 }
 0x1a5   : > { %1840 = vmatpush1.bf16.msra.mxu0 %v1444_v56  ;;  %v1373_v34 = vsel %vm1371_vm2, %v2876_v33, %v2880_v27  ;;  %v1374_v35 = vsel %vm1371_vm2, %v2880_v27, %v2881_v17 }
 0x1a6   : > { %1841 = vmatprep.subr.bf16.mxu0 %v3659_v3 }
 0x1a8   : > { %v2889_v0 = vpop.permute.xlu1 %2888 }
 0x1a9   : > { %v2891_v4 = vunpack.i.h.bf16 %v2889_v0  ;;  %v2890_v28 = vunpack.i.l.bf16 %v2889_v0  ;;  %v3776_v26 = vpop.permute.xlu0 %2913  ;;  %1842 = vmatpush1.bf16.msra.mxu0 %v3192_v36 }
 0x1aa   : > { %v2916_v38 = vunpack.i.h.bf16 %v3776_v26  ;;  %v2915_v44 = vunpack.i.l.bf16 %v3776_v26 }
 0x1ab   : > { %v1390_v15 = vsel %vm1371_vm2, %v2886_v6, %v2890_v28  ;;  %v1391_v19 = vsel %vm1371_vm2, %v2890_v28, %v2891_v4 }
 0x1ac   : > { %v3787_v37 = vpack.c.bf16 %v1390_v15, %v1373_v34  ;;  %v3789_v29 = vpack.c.bf16 %v1391_v19, %v1374_v35  ;;  %v2894_v42 = vpop.permute.xlu1 %2893  ;;  %v1243_v51 = vsel %vm1222_vm3, %v2915_v44, %v2916_v38 }
 0x1ad   : > { %v2919_v24 = vpop.permute.xlu0 %2918  ;;  %v2896_v20 = vunpack.i.h.bf16 %v2894_v42  ;;  %v2895_v1 = vunpack.i.l.bf16 %v2894_v42  ;;  %v3798_v8 = vpack.c.bf16 %v1243_v51, %v1226_v31 }
 0x1ae   : > { %1892 = vmatprep.subr.bf16.mxu1 %v3789_v29  ;;  %v2921_v30 = vunpack.i.h.bf16 %v2919_v24  ;;  %v2920_v53 = vunpack.i.l.bf16 %v2919_v24 }
 0x1af   : > { %1893 = vmatpush1.bf16.msra.mxu1 %v3787_v37  ;;  %v1225_v6 = vsel %vm1222_vm3, %v2896_v20, %v2900_v47  ;;  %v1224_v33 = vsel %vm1222_vm3, %v2895_v1, %v2896_v20 }
 0x1b0   : > { %1894 = vmatprep.subr.bf16.mxu1 %v3663_v7  ;;  %v2904_v54 = vpop.permute.xlu1 %2903  ;;  %v1375_v59 = vsel %vm1371_vm2, %v2881_v17, %v2920_v53  ;;  %v1392_v60 = vsel %vm1371_vm2, %v2891_v4, %v2921_v30 }
 0x1b1   : > { %v2906_v9 = vunpack.i.h.bf16 %v2904_v54  ;;  %v2905_v21 = vunpack.i.l.bf16 %v2904_v54  ;;  %v3814_v11 = vpack.c.bf16 %v1392_v60, %v1375_v59 }
 0x1b3   : > { %1895 = vmatpush1.bf16.msra.mxu1 %v3667_v50  ;;  %v1242_v13 = vsel %vm1222_vm3, %v2906_v9, %v2915_v44  ;;  %v1241_v18 = vsel %vm1222_vm3, %v2905_v21, %v2906_v9 }
 0x1b4   : > { %1896 = vmatprep.subr.bf16.mxu1 %v3798_v8  ;;  %v3808_v46 = vpack.c.bf16 %v1242_v13, %v1225_v6  ;;  %v3810_v52 = vpop.permute.xlu1 %2908  ;;  %v1509_v5 = vpack.c.bf16 %v1241_v18, %v1224_v33  ;;  %v3817_v16 = vpop.permute.xlu0 %2928 }
 0x1b5   : > { %v2911_v62 = vunpack.i.h.bf16 %v3810_v52  ;;  %v2910_v56 = vunpack.i.l.bf16 %v3810_v52  ;;  %v2931_v26 = vunpack.i.h.bf16 %v3817_v16  ;;  %v2930_v35 = vunpack.i.l.bf16 %v3817_v16 }
 0x1b6   : > { %1843 = vmatprep.subr.bf16.mxu0 %v1509_v5 }
 0x1b7   : > { %1897 = vmatpush1.bf16.msra.mxu1 %v3808_v46  ;;  %v1223_v17 = vsel %vm1222_vm3, %v2910_v56, %v2895_v1  ;;  %v1240_v27 = vsel %vm1222_vm3, %v2911_v62, %v2905_v21  ;;  %v1376_v47 = vsel %vm1371_vm2, %v2920_v53, %v2930_v35  ;;  %v1393_v42 = vsel %vm1371_vm2, %v2921_v30, %v2931_v26 }
 0x1b8   : > { %1898 = vmatprep.subr.bf16.mxu1 %v3814_v11  ;;  %v1508_v0 = vpack.c.bf16 %v1240_v27, %v1223_v17  ;;  %v3858_v53 = vpop.permute.xlu0 %2933 }
 0x1b9   : > { %v2924_v4 = vpop.permute.xlu1 %2923  ;;  %v2936_v54 = vunpack.i.h.bf16 %v3858_v53  ;;  %v2935_v9 = vunpack.i.l.bf16 %v3858_v53 }
 0x1ba   : > { %v2926_v28 = vunpack.i.h.bf16 %v2924_v4  ;;  %v2925_v34 = vunpack.i.l.bf16 %v2924_v4  ;;  %1844 = vmatpush1.bf16.msra.mxu0 %v1508_v0 }
 0x1bb   : > { %1899 = vmatpush1.bf16.msra.mxu1 %v3789_v29  ;;  %1845 = vmatprep.subr.bf16.mxu0 %v3787_v37  ;;  %v1378_v13 = vsel %vm1371_vm2, %v2935_v9, %v2936_v54 }
 0x1bc   : > { %1900 = vmatprep.subr.bf16.mxu1 %v3671_v22  ;;  %v1227_v12 = vsel %vm1222_vm3, %v2901_v43, %v2925_v34  ;;  %v1244_v15 = vsel %vm1222_vm3, %v2916_v38, %v2926_v28  ;;  %v3845_v43 = vpack.c.bf16 %v1393_v42, %v1376_v47  ;;  %v1793_v38 = vld [vmem:[%s4596_s5 + $0x18] sm:$0xff]  ;;  %v3878_v6 = vpop.permute.xlu0 %2948 }
 0x1bd   : > { %v3833_v44 = vpop.permute.xlu1 %2938  ;;  %v3835_v19 = vpack.c.bf16 %v1244_v15, %v1227_v12  ;;  %1811 = vperm.xlu1 %3047, %v1793_v38   ;;  %v2951_v17 = vunpack.i.h.bf16 %v3878_v6  ;;  %v2950_v27 = vunpack.i.l.bf16 %v3878_v6  ;;  %v3929_v47 = vld [vmem:[%s4595_s4 + $0x10] ss:$8 sps:$4 sm:$0xff]  }
 0x1be   : > { %1846 = vmatpush1.bf16.msra.mxu0 %v3769_v23  ;;  %v2941_v23 = vunpack.i.h.bf16 %v3833_v44  ;;  %v2940_v51 = vunpack.i.l.bf16 %v3833_v44 }
 0x1bf   : > { %1901 = vmatpush1.bf16.msra.mxu1 %v3663_v7  ;;  %1847 = vmatprep.subr.bf16.mxu0 %v3667_v50  ;;  %v1230_v12 = vsel %vm1222_vm3, %v2950_v27, %v2951_v17 }
 0x1c0   : > { %1902 = vmatprep.subr.bf16.mxu1 %v3835_v19  ;;  %v1245_v1 = vsel %vm1222_vm3, %v2926_v28, %v2941_v23  ;;  %v2959_v28 = vpop.permute.xlu0 %2958 }
 0x1c1   : > { %v3843_v24 = vpop.permute.xlu1 %2943 }
 0x1c2   : > { %1848 = vmatpush1.bf16.msra.mxu0 %v3659_v3  ;;  %v2946_v31 = vunpack.i.h.bf16 %v3843_v24  ;;  %v2945_v20 = vunpack.i.l.bf16 %v3843_v24  ;;  %v1228_v3 = vsel %vm1222_vm3, %v2925_v34, %v2940_v51  ;;  %v2961_v34 = vunpack.i.h.bf16 %v2959_v28 }
 0x1c3   : > { %1903 = vmatpush1.bf16.msra.mxu1 %v3798_v8  ;;  %1849 = vmatprep.subr.bf16.mxu0 %v3808_v46  ;;  %v3873_v59 = vpack.c.bf16 %v1245_v1, %v1228_v3  ;;  %v1229_v24 = vsel %vm1222_vm3, %v2940_v51, %v2950_v27 }
 0x1c4   : > { %1904 = vmatprep.subr.bf16.mxu1 %v3845_v43  ;;  %v1395_v60 = vsel %vm1371_vm2, %v2945_v20, %v2946_v31  ;;  %v1394_v33 = vsel %vm1371_vm2, %v2931_v26, %v2945_v20  ;;  %v2960_v26 = vunpack.i.l.bf16 %v2959_v28  ;;  %v1396_v42 = vsel %vm1371_vm2, %v2946_v31, %v2961_v34  ;;  %v3953_v53 = vpop.permute.xlu0 %2968 }
 0x1c5   : > { %v3856_v30 = vpop.permute.xlu1 %2953  ;;  %v3886_v18 = vpack.c.bf16 %v1395_v60, %v1378_v13  ;;  %v2971_v20 = vunpack.i.h.bf16 %v3953_v53  ;;  %v2970_v3 = vunpack.i.l.bf16 %v3953_v53 }
 0x1c6   : > { %1850 = vmatpush1.bf16.msra.mxu0 %v1509_v5  ;;  %v2956_v5 = vunpack.i.h.bf16 %v3856_v30  ;;  %v2955_v16 = vunpack.i.l.bf16 %v3856_v30 }
 0x1c7   : > { %1905 = vmatpush1.bf16.msra.mxu1 %v3814_v11  ;;  %1851 = vmatprep.subr.bf16.mxu0 %v3789_v29 }
 0x1c8   : > { %1906 = vmatprep.subr.bf16.mxu1 %v3675_v10  ;;  %v1246_v15 = vsel %vm1222_vm3, %v2941_v23, %v2955_v16 }
 0x1c9   : > { %v3871_v21 = vpop.permute.xlu1 %2963  ;;  %v3939_v38 = vpack.c.bf16 %v1246_v15, %v1229_v24 }
 0x1ca   : > { %1852 = vmatpush1.bf16.msra.mxu0 %v3787_v37  ;;  %v3891_v37 = vld [vmem:[%s4595_s4] ss:$8 sps:$4 sm:$0xff]   ;;  %v2966_v44 = vunpack.i.h.bf16 %v3871_v21  ;;  %v2965_v51 = vunpack.i.l.bf16 %v3871_v21  ;;  %v1397_v21 = vsel %vm1371_vm2, %v2961_v34, %v2971_v20 }
 0x1cb   : > { %1907 = vmatpush1.bf16.msra.mxu1 %v3671_v22  ;;  %1853 = vmatprep.subr.bf16.mxu0 %v3663_v7  ;;  %v1377_v7 = vsel %vm1371_vm2, %v2930_v35, %v2935_v9 }
 0x1cc   : > { %1908 = vmatprep.subr.bf16.mxu1 %v3873_v59  ;;  %v3902_v0 = vpack.c.bf16 %v1394_v33, %v1377_v7  ;;  %v1248_v1 = vsel %vm1222_vm3, %v2956_v5, %v2966_v44 }
 0x1cd   : > { %v3882_v29 = vpop.permute.xlu1 %2978 }
 0x1ce   : > { %1854 = vmatpush1.bf16.msra.mxu0 %v3667_v50  ;;  %v3909_v50 = vld [vmem:[%s4595_s4 + $0x14] ss:$8 sps:$4 sm:$0xff]   ;;  %v2981_v13 = vunpack.i.h.bf16 %v3882_v29  ;;  %v2980_v33 = vunpack.i.l.bf16 %v3882_v29 }
 0x1cf   : > { %1909 = vmatpush1.bf16.msra.mxu1 %v3835_v19  ;;  %1855 = vmatprep.subr.bf16.mxu0 %v3798_v8  ;;  %v1247_v8 = vsel %vm1222_vm3, %v2955_v16, %v2956_v5  ;;  %v2974_v5 = vpop.permute.xlu0 %2973 }
 0x1d0   : > { %1998 = vmatprep.subr.bf16.mxu1 %v3886_v18  ;;  %v1249_v29 = vsel %vm1222_vm3, %v2966_v44, %v2981_v13 }
 0x1d1   : > { %v3904_v4 = vpop.permute.xlu1 %2983 }
 0x1d2   : > { %1925 = vmatmul.mubr.bf16.vlgmr.msra.gmra.mrb[16].mxu1 %v3891_v37  ;;  %1856 = vmatpush1.bf16.msra.mxu0 %v3808_v46  ;;  %v3924_v46 = vpack.c.bf16 %v1247_v8, %v1230_v12  ;;  %v2985_v27 = vunpack.i.l.bf16 %v3904_v4  ;;  %v2975_v8 = vunpack.i.l.bf16 %v2974_v5 }
 0x1d3   : > { %1999 = vmatpush1.bf16.msra.mxu1 %v3902_v0  ;;  %1945 = vmatprep.subr.bf16.mxu0 %v3845_v43 }
 0x1d4   : > { %2000 = vmatprep.subr.bf16.mxu1 %v3679_v2  ;;  %2791 = vmatprep.mubr.msk.bf16.mxu1 %vm1832_vm1, %v3909_v50 }
 0x1d5   : > { %v3917_v35 = vpop.permute.xlu1 %2993  ;;  %1872 = vmatmul.mubr.bf16.vlgmr.msra.gmra.mrb[16].mxu0 %v3891_v37 }
 0x1d6   : > { %1946 = vmatpush1.bf16.msra.mxu0 %v3814_v11  ;;  %2789 = vmatprep.mubr.msk.bf16.mxu0 %vm1832_vm1, %v3909_v50  ;;  %v1379_v11 = vsel %vm1371_vm2, %v2936_v54, %v2960_v26  ;;  %v2996_v15 = vunpack.i.h.bf16 %v3917_v35 }
 0x1d7   : > { %2001 = vmatpush1.bf16.msra.mxu1 %v3683_v57  ;;  %1947 = vmatprep.subr.bf16.mxu0 %v3675_v10  ;;  %v3947_v30 = vpack.c.bf16 %v1396_v42, %v1379_v11  ;;  %v2995_v42 = vunpack.i.l.bf16 %v3917_v35 }
 0x1d8   : > { %2002 = vmatprep.subr.bf16.mxu1 %v3924_v46 }
 0x1d9   : > { %v3941_v23 = vpop.permute.xlu1 %3003  ;;  %v1250_v53 = vsel %vm1222_vm3, %v2981_v13, %v2995_v42 }
 0x1da   : > { %1935 = vmatmul.mubr.bf16.gmra.mrb[20].mxu1 %v3929_v47  ;;  %1948 = vmatpush1.bf16.msra.mxu0 %v3671_v22  ;;  %v1231_v22 = vsel %vm1222_vm3, %v2951_v17, %v2965_v51  ;;  %v2986_v17 = vunpack.i.h.bf16 %v3904_v4  ;;  %v2976_v4 = vunpack.i.h.bf16 %v2974_v5 }
 0x1db   : > { %2003 = vmatpush1.bf16.msra.mxu1 %v3939_v38  ;;  %1949 = vmatprep.subr.bf16.mxu0 %v3873_v59  ;;  %v3974_v9 = vpack.c.bf16 %v1248_v1, %v1231_v22 }
 0x1dc   : > { %2004 = vmatprep.subr.bf16.mxu1 %v3947_v30  ;;  %2794 = vmatprep.mubr.msk.bf16.mxu1 %vm1832_vm1, %v3728_v63  ;;  %v1382_v52 = vsel %vm1371_vm2, %v2975_v8, %v2976_v4 }
 0x1dd   : > { %v3957_v31 = vpop.permute.xlu1 %3018  ;;  %1882 = vmatmul.mubr.bf16.gmra.mrb[20].mxu0 %v3929_v47 }
 0x1de   : > { %1950 = vmatpush1.bf16.msra.mxu0 %v3835_v19  ;;  %2792 = vmatprep.mubr.msk.bf16.mxu0 %vm1832_vm1, %v3728_v63  ;;  %v1380_v19 = vsel %vm1371_vm2, %v2960_v26, %v2970_v3  ;;  %v2989_v26 = vpop.permute.xlu0 %2988 }
 0x1df   : > { %2005 = vmatpush1.bf16.msra.mxu1 %v3886_v18  ;;  %1951 = vmatprep.subr.bf16.mxu0 %v3902_v0  ;;  %v3984_v6 = vpack.c.bf16 %v1397_v21, %v1380_v19  ;;  %v2990_v24 = vunpack.i.l.bf16 %v2989_v26  ;;  %v3006_v19 = vunpack.i.h.bf16 %v3941_v23  ;;  %v3005_v21 = vunpack.i.l.bf16 %v3941_v23 }
 0x1e0   : > { %2006 = vmatprep.subr.bf16.mxu1 %v3687_v58 }
 0x1e1   : > { %v3970_v54 = vpop.permute.xlu1 %3023  ;;  %v1252_v23 = vsel %vm1222_vm3, %v2996_v15, %v3006_v19 }
 0x1e2   : > { %1952 = vmatpush1.bf16.msra.mxu0 %v3845_v43  ;;  %v2999_v44 = vpop.permute.xlu0 %2998 }
 0x1e3   : > { %2007 = vmatpush1.bf16.msra.mxu1 %v3679_v2  ;;  %1953 = vmatprep.subr.bf16.mxu0 %v3683_v57  ;;  %v3001_v35 = vunpack.i.h.bf16 %v2999_v44 }
 0x1e4   : > { %2008 = vmatprep.subr.bf16.mxu1 %v3974_v9 }
 0x1e5   : > { %v3982_v60 = vpop.permute.xlu1 %3033 }
 0x1e6   : > { %1954 = vmatpush1.bf16.msra.mxu0 %v3675_v10  ;;  %v1232_v10 = vsel %vm1222_vm3, %v2965_v51, %v2980_v33  ;;  %v3009_v13 = vpop.permute.xlu0 %3008 }
 0x1e7   : > { %2009 = vmatpush1.bf16.msra.mxu1 %v3924_v46  ;;  %1955 = vmatprep.subr.bf16.mxu0 %v3939_v38  ;;  %v4018_v34 = vpack.c.bf16 %v1249_v29, %v1232_v10  ;;  %v3010_v5 = vunpack.i.l.bf16 %v3009_v13  ;;  %v3021_v29 = vunpack.i.h.bf16 %v3957_v31 }
 0x1e8   : > { %2010 = vmatprep.subr.bf16.mxu1 %v3984_v6 }
 0x1e9   : > { %v3992_v43 = vpop.permute.xlu1 %3043 }
 0x1ea   : > { %v3046_v16 = vunpack.i.h.bf16 %v3992_v43  ;;  %v3045_v7 = vunpack.i.l.bf16 %v3992_v43  ;;  %1956 = vmatpush1.bf16.msra.mxu0 %v3873_v59 }
 0x1eb   : > { %2011 = vmatpush1.bf16.msra.mxu1 %v3947_v30  ;;  %1957 = vmatprep.subr.bf16.mxu0 %v3886_v18 }
 0x1ec   : > { %2012 = vmatprep.subr.bf16.mxu1 %v3692_v61  ;;  %v4009_v28 = vsel %vm1222_vm3, %v3045_v7, %v2910_v56  ;;  %v4016_v59 = vsel %vm1222_vm3, %v3046_v16, %v2911_v62  ;;  %v1399_v56 = vsel %vm1371_vm2, %v2985_v27, %v2986_v17  ;;  %v1398_v62 = vsel %vm1371_vm2, %v2971_v20, %v2985_v27 }
 0x1ed   : > { %v1625_v18 = vpack.c.bf16 %v4016_v59, %v4009_v28  ;;  %v4029_v12 = vpack.c.bf16 %v1399_v56, %v1382_v52  ;;  %v1400_v20 = vsel %vm1371_vm2, %v2986_v17, %v3001_v35  ;;  %v3025_v56 = vunpack.i.l.bf16 %v3970_v54 }
 0x1ee   : > { %1958 = vmatpush1.bf16.msra.mxu0 %v3902_v0  ;;  %v1381_v0 = vsel %vm1371_vm2, %v2970_v3, %v2975_v8  ;;  %v1233_v3 = vsel %vm1222_vm3, %v2980_v33, %v2990_v24  ;;  %v3011_v33 = vunpack.i.h.bf16 %v3009_v13  ;;  %v3026_v8 = vunpack.i.h.bf16 %v3970_v54 }
 0x1ef   : > { %2013 = vmatpush1.bf16.msra.mxu1 %v3687_v58  ;;  %1959 = vmatprep.subr.bf16.mxu0 %v3679_v2  ;;  %v2991_v2 = vunpack.i.h.bf16 %v2989_v26  ;;  %v4038_v11 = vpack.c.bf16 %v1398_v62, %v1381_v0  ;;  %v4059_v22 = vpack.c.bf16 %v1250_v53, %v1233_v3  ;;  %v3036_v0 = vunpack.i.h.bf16 %v3982_v60 }
 0x1f0   : > { %2014 = vmatprep.subr.bf16.mxu1 %v4018_v34  ;;  %v1401_v27 = vsel %vm1371_vm2, %v3001_v35, %v3011_v33  ;;  %v1403_v54 = vsel %vm1371_vm2, %v3025_v56, %v3026_v8 }
 0x1f1   : > { %v1234_v51 = vsel %vm1222_vm3, %v2990_v24, %v2991_v2 }
 0x1f2   : > { %1960 = vmatpush1.bf16.msra.mxu0 %v3683_v57  ;;  %v1251_v57 = vsel %vm1222_vm3, %v2995_v42, %v2996_v15 }
 0x1f3   : > { %2015 = vmatpush1.bf16.msra.mxu1 %v3974_v9  ;;  %1961 = vmatprep.subr.bf16.mxu0 %v3924_v46  ;;  %v3000_v46 = vunpack.i.l.bf16 %v2999_v44 }
 0x1f4   : > { %2104 = vmatprep.subr.bf16.mxu1 %v4029_v12 }
 0x1f5   : > { %v1383_v1 = vsel %vm1371_vm2, %v2976_v4, %v3000_v46  ;;  %v3020_v4 = vunpack.i.l.bf16 %v3957_v31  ;;  %v1253_v31 = vsel %vm1222_vm3, %v3006_v19, %v3021_v29 }
 0x1f6   : > { %2031 = vmatmul.mubr.bf16.vlgmr.msra.gmra.mrb[24].mxu1 %v3891_v37  ;;  %1962 = vmatpush1.bf16.msra.mxu0 %v3939_v38  ;;  %v4051_v38 = vpack.c.bf16 %v1251_v57, %v1234_v51 }
 0x1f7   : > { %2105 = vmatpush1.bf16.msra.mxu1 %v4038_v11  ;;  %2051 = vmatprep.subr.bf16.mxu0 %v3984_v6  ;;  %v1236_v26 = vsel %vm1222_vm3, %v3005_v21, %v3020_v4 }
 0x1f8   : > { %2106 = vmatprep.subr.bf16.mxu1 %v3696_v14  ;;  %2795 = vmatprep.mubr.msk.bf16.mxu1 %vm1832_vm1, %v3909_v50  ;;  %v4108_v62 = vpack.c.bf16 %v1253_v31, %v1236_v26 }
 0x1f9   : > { %1978 = vmatmul.mubr.bf16.vlgmr.msra.gmra.mrb[24].mxu0 %v3891_v37 }
 0x1fa   : > { %2052 = vmatpush1.bf16.msra.mxu0 %v3947_v30  ;;  %2793 = vmatprep.mubr.msk.bf16.mxu0 %vm1832_vm1, %v3909_v50  ;;  %v4065_v30 = vpack.c.bf16 %v1400_v20, %v1383_v1 }
 0x1fb   : > { %2107 = vmatpush1.bf16.msra.mxu1 %v3700_v32  ;;  %2053 = vmatprep.subr.bf16.mxu0 %v3692_v61 }
 0x1fc   : > { %2108 = vmatprep.subr.bf16.mxu1 %v4051_v38 }
 0x1fe   : > { %2041 = vmatmul.mubr.bf16.gmra.mrb[28].mxu1 %v3929_v47  ;;  %2054 = vmatpush1.bf16.msra.mxu0 %v3687_v58  ;;  %v1235_v58 = vsel %vm1222_vm3, %v2991_v2, %v3005_v21  ;;  %v3035_v2 = vunpack.i.l.bf16 %v3982_v60 }
 0x1ff   : > { %2109 = vmatpush1.bf16.msra.mxu1 %v4059_v22  ;;  %2055 = vmatprep.subr.bf16.mxu0 %v4018_v34  ;;  %v4084_v17 = vpack.c.bf16 %v1252_v23, %v1235_v58 }
 0x200   : > { %2110 = vmatprep.subr.bf16.mxu1 %v4065_v30  ;;  %2798 = vmatprep.mubr.msk.bf16.mxu1 %vm1832_vm1, %v3728_v63  ;;  %v1255_v60 = vsel %vm1222_vm3, %v3035_v2, %v3036_v0  ;;  %v1254_v51 = vsel %vm1222_vm3, %v3021_v29, %v3035_v2 }
 0x201   : > { %1988 = vmatmul.mubr.bf16.gmra.mrb[28].mxu0 %v3929_v47 }
 0x202   : > { %2056 = vmatpush1.bf16.msra.mxu0 %v3974_v9  ;;  %2796 = vmatprep.mubr.msk.bf16.mxu0 %vm1832_vm1, %v3728_v63  ;;  %v1384_v9 = vsel %vm1371_vm2, %v3000_v46, %v3010_v5 }
 0x203   : > { %2111 = vmatpush1.bf16.msra.mxu1 %v4029_v12  ;;  %2057 = vmatprep.subr.bf16.mxu0 %v4038_v11  ;;  %v4092_v10 = vpack.c.bf16 %v1401_v27, %v1384_v9 }
 0x204   : > { %2112 = vmatprep.subr.bf16.mxu1 %v3704_v41 }
 0x206   : > { %2058 = vmatpush1.bf16.msra.mxu0 %v3984_v6  ;;  %v3014_v6 = vpop.permute.xlu0 %3013 }
 0x207   : > { %2113 = vmatpush1.bf16.msra.mxu1 %v3696_v14  ;;  %2059 = vmatprep.subr.bf16.mxu0 %v3700_v32  ;;  %v3015_v52 = vunpack.i.l.bf16 %v3014_v6 }
 0x208   : > { %2114 = vmatprep.subr.bf16.mxu1 %v4084_v17 }
 0x209   : > { %v1385_v24 = vsel %vm1371_vm2, %v3010_v5, %v3015_v52  ;;  %v4204_v5 = vld [vmem:[%s3339_s13 + $0x40] sm:$0xff] }
 0x20a   : > { %2060 = vmatpush1.bf16.msra.mxu0 %v3692_v61  ;;  %v3016_v61 = vunpack.i.h.bf16 %v3014_v6  ;;  %v2471_v58 = vunpack.c.l.bf16 %v4204_v5  ;;  %v2472_v23 = vunpack.c.h.bf16 %v4204_v5 }
 0x20b   : > { %2115 = vmatpush1.bf16.msra.mxu1 %v4051_v38  ;;  %2061 = vmatprep.subr.bf16.mxu0 %v4059_v22 }
 0x20c   : > { %2116 = vmatprep.subr.bf16.mxu1 %v4092_v10  ;;  %v1386_v15 = vsel %vm1371_vm2, %v3015_v52, %v3016_v61 }
 0x20d   : > { %v1459_v42 = vpack.c.bf16 %v1403_v54, %v1386_v15 }
 0x20e   : > { %2062 = vmatpush1.bf16.msra.mxu0 %v4018_v34  ;;  %v3029_v34 = vpop.permute.xlu0 %3028 }
 0x20f   : > { %2117 = vmatpush1.bf16.msra.mxu1 %v4065_v30  ;;  %2063 = vmatprep.subr.bf16.mxu0 %v4029_v12  ;;  %v1402_v12 = vsel %vm1371_vm2, %v3011_v33, %v3025_v56 }
 0x210   : > { %2118 = vmatprep.subr.bf16.mxu1 %v3708_v45  ;;  %v1458_v44 = vpack.c.bf16 %v1402_v12, %v1385_v24 }
 0x212   : > { %2064 = vmatpush1.bf16.msra.mxu0 %v4038_v11  ;;  %v3030_v11 = vunpack.i.l.bf16 %v3029_v34  ;;  %v3039_v57 = vpop.permute.xlu0 %3038 }
 0x213   : > { %2119 = vmatpush1.bf16.msra.mxu1 %v3704_v41  ;;  %2065 = vmatprep.subr.bf16.mxu0 %v3696_v14  ;;  %v3031_v14 = vunpack.i.h.bf16 %v3029_v34  ;;  %v3040_v35 = vunpack.i.l.bf16 %v3039_v57 }
 0x214   : > { %2120 = vmatprep.subr.bf16.mxu1 %v4108_v62  ;;  %v1237_v20 = vsel %vm1222_vm3, %v3020_v4, %v3030_v11  ;;  %v4216_v4 = vld [vmem:[%s3339_s13 + $0x80] sm:$0xff] }
 0x215   : > { %v1238_v46 = vsel %vm1222_vm3, %v3030_v11, %v3031_v14  ;;  %v1522_v3 = vpack.c.bf16 %v1254_v51, %v1237_v20  ;;  %v1388_v21 = vsel %vm1371_vm2, %v3040_v35, %v2870_v25  ;;  %v2458_v25 = vunpack.c.h.bf16 %v3057_v39 }
 0x216   : > { %2066 = vmatpush1.bf16.msra.mxu0 %v3700_v32  ;;  %v3041_v32 = vunpack.i.h.bf16 %v3039_v57  ;;  %v1523_v53 = vpack.c.bf16 %v1255_v60, %v1238_v46  ;;  %v2487_v6 = vunpack.c.l.bf16 %v4216_v4 }
 0x217   : > { %2121 = vmatpush1.bf16.msra.mxu1 %v4084_v17  ;;  %2067 = vmatprep.subr.bf16.mxu0 %v4051_v38 }
 0x218   : > { %2210 = vmatprep.subr.bf16.mxu1 %v1459_v42  ;;  %v1404_v38 = vsel %vm1371_vm2, %v3026_v8, %v3041_v32  ;;  %v1405_v43 = vsel %vm1371_vm2, %v3041_v32, %v2871_v40  ;;  %v2457_v40 = vunpack.c.l.bf16 %v3057_v39  ;;  %v2488_v8 = vunpack.c.h.bf16 %v4216_v4 }
 0x21a   : > { %2137 = vmatmul.mubr.bf16.vlgmr.msra.gmra.mrb[32].mxu1 %v3891_v37  ;;  %2068 = vmatpush1.bf16.msra.mxu0 %v4059_v22  ;;  %v1387_v22 = vsel %vm1371_vm2, %v3016_v61, %v3040_v35 }
 0x21b   : > { %2211 = vmatpush1.bf16.msra.mxu1 %v1458_v44  ;;  %2157 = vmatprep.subr.bf16.mxu0 %v4092_v10  ;;  %v1540_v1 = vpack.c.bf16 %v1404_v38, %v1387_v22 }
 0x21c   : > { %2212 = vmatprep.subr.bf16.mxu1 %v3712_v48  ;;  %2799 = vmatprep.mubr.msk.bf16.mxu1 %vm1832_vm1, %v3909_v50 }
 0x21d   : > { %2084 = vmatmul.mubr.bf16.vlgmr.msra.gmra.mrb[32].mxu0 %v3891_v37 }
 0x21e   : > { %2158 = vmatpush1.bf16.msra.mxu0 %v4065_v30  ;;  %2797 = vmatprep.mubr.msk.bf16.mxu0 %vm1832_vm1, %v3909_v50  ;;  %v1239_v30 = vsel %vm1222_vm3, %v3031_v14, %v3045_v7  ;;  %v4198_v7 = vld [vmem:[%s3339_s13] sm:$0xff] }
 0x21f   : > { %2213 = vmatpush1.bf16.msra.mxu1 %v3716_v49  ;;  %2159 = vmatprep.subr.bf16.mxu0 %v3708_v45  ;;  %v2455_v28 = vunpack.c.l.bf16 %v4198_v7 }
 0x220   : > { %2214 = vmatprep.subr.bf16.mxu1 %v1523_v53 }
 0x222   : > { %2147 = vmatmul.mubr.bf16.gmra.mrb[36].mxu1 %v3929_v47  ;;  %2160 = vmatpush1.bf16.msra.mxu0 %v3704_v41  ;;  %v1256_v41 = vsel %vm1222_vm3, %v3036_v0, %v3046_v16  ;;  %v1591_v16 = vpack.c.bf16 %v1405_v43, %v1388_v21 }
 0x223   : > { %2215 = vmatpush1.bf16.msra.mxu1 %v1522_v3  ;;  %2161 = vmatprep.subr.bf16.mxu0 %v4108_v62  ;;  %v1574_v19 = vpack.c.bf16 %v1256_v41, %v1239_v30 }
 0x224   : > { %2216 = vmatprep.subr.bf16.mxu1 %v1540_v1  ;;  %2802 = vmatprep.mubr.msk.bf16.mxu1 %vm1832_vm1, %v3728_v63 }
 0x225   : > { %2094 = vmatmul.mubr.bf16.gmra.mrb[36].mxu0 %v3929_v47 }
 0x226   : > { %2162 = vmatpush1.bf16.msra.mxu0 %v4084_v17  ;;  %2800 = vmatprep.mubr.msk.bf16.mxu0 %vm1832_vm1, %v3728_v63  ;;  %v4191_v63 = vpop.permute.xlu0 %1796  ;;  %v4209_v17 = vld [vmem:[%s3339_s13 + $0x88] sm:$0xff] }
 0x227   : > { %2217 = vmatpush1.bf16.msra.mxu1 %v1459_v42  ;;  %2163 = vmatprep.subr.bf16.mxu0 %v1458_v44  ;;  %v2489_v9 = vunpack.c.l.bf16 %v4209_v17  ;;  %v2490_v29 = vunpack.c.h.bf16 %v4209_v17 }
 0x228   : > { %2218 = vmatprep.subr.bf16.mxu1 %v3719_v55 }
 0x22a   : > { %2164 = vmatpush1.bf16.msra.mxu0 %v4092_v10  ;;  %v4225_v35 = vpop.permute.xlu0 %1806 }
 0x22b   : > { %2219 = vmatpush1.bf16.msra.mxu1 %v3712_v48  ;;  %2165 = vmatprep.subr.bf16.mxu0 %v3716_v49 }
 0x22c   : > { %2220 = vmatprep.subr.bf16.mxu1 %v1574_v19 }
 0x22e   : > { %2166 = vmatpush1.bf16.msra.mxu0 %v3708_v45  ;;  %v4184_v45 = vld [vmem:[%s3339_s13 + $0xc0] sm:$0xff] }
 0x22f   : > { %2221 = vmatpush1.bf16.msra.mxu1 %v1523_v53  ;;  %2167 = vmatprep.subr.bf16.mxu0 %v1522_v3  ;;  %v2504_v61 = vunpack.c.h.bf16 %v4184_v45 }
 0x230   : > { %2222 = vmatprep.subr.bf16.mxu1 %v1591_v16 }
 0x232   : > { %2168 = vmatpush1.bf16.msra.mxu0 %v4108_v62 }
 0x233   : > { %2223 = vmatpush1.bf16.msra.mxu1 %v1540_v1  ;;  %2169 = vmatprep.subr.bf16.mxu0 %v1459_v42 }
 0x234   : > { %2224 = vmatprep.subr.bf16.mxu1 %v3192_v36 }
 0x236   : > { %2170 = vmatpush1.bf16.msra.mxu0 %v1458_v44 }
 0x237   : > { %2225 = vmatpush1.bf16.msra.mxu1 %v3719_v55  ;;  %2171 = vmatprep.subr.bf16.mxu0 %v3712_v48  ;;  %v2503_v48 = vunpack.c.l.bf16 %v4184_v45 }
 0x238   : > { %2226 = vmatprep.subr.bf16.mxu1 %v1625_v18  ;;  %v2456_v18 = vunpack.c.h.bf16 %v4198_v7 }
 0x23a   : > { %2172 = vmatpush1.bf16.msra.mxu0 %v3716_v49  ;;  %v4188_v49 = vld [vmem:[%s3339_s13 + $0xc8] sm:$0xff] }
 0x23b   : > { %2227 = vmatpush1.bf16.msra.mxu1 %v1574_v19  ;;  %2173 = vmatprep.subr.bf16.mxu0 %v1523_v53  ;;  %v2505_v55 = vunpack.c.l.bf16 %v4188_v49  ;;  %v2506_v34 = vunpack.c.h.bf16 %v4188_v49  ;;  %v4290_v49 = vld [vmem:[%s3339_s13 + $0x50] sm:$0xff] }
 0x23e   : > { %2243 = vmatmul.mubr.bf16.vlgmr.msra.gmra.mrb[40].mxu1 %v3891_v37  ;;  %2174 = vmatpush1.bf16.msra.mxu0 %v1522_v3 }
 0x23f   : > { %2803 = vmatprep.mubr.msk.bf16.mxu1 %vm1832_vm1, %v3909_v50 }
 0x241   : > { %2190 = vmatmul.mubr.bf16.vlgmr.msra.gmra.mrb[40].mxu0 %v3891_v37  ;;  %v4194_v37 = vpop.permute.xlu1 %1801 }
 0x242   : > { %2801 = vmatprep.mubr.msk.bf16.mxu0 %vm1832_vm1, %v3909_v50  ;;  %v3058_v50 = vld [vmem:[%s3339_s13 + $0x48] sm:$0xff] }
 0x243   : > { %v2474_v59 = vunpack.c.h.bf16 %v3058_v50 }
 0x245   : > { %v4237_v19 = vpop.permute.xlu1 %1811 }
 0x246   : > { %2253 = vmatmul.mubr.bf16.gmra.mrb[44].mxu1 %v3929_v47 }
 0x249   : > { %2200 = vmatmul.mubr.bf16.gmra.mrb[44].mxu0 %v3929_v47  ;;  %v2473_v47 = vunpack.c.l.bf16 %v3058_v50 }
 0x2a5   : > { %v1926_v36 = vpop.f32.mrb[16].mxu1 }
 0x2a6   : > { %v1927_v13 = vadd.f32 %v1926_v36, %v4191_v63  ;;  %v1928_v33 = vpop.f32.mrb[17].mxu1 }
 0x2a7   : > { %v1929_v27 = vadd.f32 %v1928_v33, %v4191_v63  ;;  %v1930_v10 = vpop.f32.mrb[18].mxu1 }
 0x2a8   : > { %vm2265_vm4 = vcmp.gt.f32.partialorder %v1927_v13, 0.0  ;;  %v2329_v56 = vmul.f32 0.1, %v1927_v13  ;;  %v1931_v26 = vadd.f32 %v1930_v10, %v4194_v37  ;;  %v1932_v31 = vpop.f32.mrb[19].mxu1  ;;  %v1873_v62 = vpop.f32.mrb[16].mxu0 }
 0x2a9   : > { %vm2266_vm5 = vcmp.gt.f32.partialorder %v1929_v27, 0.0  ;;  %v2330_v52 = vmul.f32 0.1, %v1929_v27  ;;  %v1933_v54 = vadd.f32 %v1932_v31, %v4194_v37  ;;  %v1874_v42 = vadd.f32 %v1873_v62, %v4191_v63  ;;  %v1875_v0 = vpop.f32.mrb[17].mxu0 }
 0x2aa   : > { %v2393_v15 = vsel %vm2265_vm4, %v1927_v13, %v2329_v56  ;;  %vm2281_vm6 = vcmp.gt.f32.partialorder %v1931_v26, 0.0  ;;  %v2345_v12 = vmul.f32 0.1, %v1931_v26  ;;  %v1877_v11 = vpop.f32.mrb[18].mxu0  ;;  %v1876_v53 = vadd.f32 %v1875_v0, %v4191_v63 }
 0x2ab   : > { %v2521_v2 = vadd.f32 %v2457_v40, %v2393_v15  ;;  %v2394_v24 = vsel %vm2266_vm5, %v1929_v27, %v2330_v52  ;;  %vm2282_vm7 = vcmp.gt.f32.partialorder %v1933_v54, 0.0  ;;  %v2346_v14 = vmul.f32 0.1, %v1933_v54  ;;  %v1879_v32 = vpop.f32.mrb[19].mxu0 }
 0x2ac   : > { %v2522_v44 = vadd.f32 %v2458_v25, %v2394_v24  ;;  %v2409_v57 = vsel %vm2281_vm6, %v1931_v26, %v2345_v12  ;;  %vm2263_vm8 = vcmp.gt.f32.partialorder %v1874_v42, 0.0  ;;  %v2327_v60 = vmul.f32 0.1, %v1874_v42 }
 0x2ad   : > { %2585 = vst [vmem:[%s4229_s19 + $0x10] sm:$0xff] %v2521_v2  ;;  %v2537_v46 = vadd.f32 %v2473_v47, %v2409_v57  ;;  %v2410_v51 = vsel %vm2282_vm7, %v1933_v54, %v2346_v14  ;;  %v1878_v38 = vadd.f32 %v1877_v11, %v4194_v37  ;;  %v1936_v20 = vpop.f32.mrb[20].mxu1  ;;  %v1880_v1 = vadd.f32 %v1879_v32, %v4194_v37 }
 0x2ae   : > { %2586 = vst [vmem:[%s4229_s19 + $0x18] sm:$0xff] %v2522_v44  ;;  %v2391_v3 = vsel %vm2263_vm8, %v1874_v42, %v2327_v60  ;;  %v2538_v22 = vadd.f32 %v2474_v59, %v2410_v51  ;;  %v1937_v30 = vadd.f32 %v1936_v20, %v4225_v35  ;;  %v1938_v41 = vpop.f32.mrb[21].mxu1  ;;  %vm2264_vm9 = vcmp.gt.f32.partialorder %v1876_v53, 0.0 }
 0x2af   : > { %2601 = vst [vmem:[%s4229_s19 + $0x90] sm:$0xff] %v2537_v46  ;;  %v2519_v21 = vadd.f32 %v2455_v28, %v2391_v3  ;;  %v2328_v43 = vmul.f32 0.1, %v1876_v53  ;;  %vm2279_vm10 = vcmp.gt.f32.partialorder %v1878_v38, 0.0  ;;  %v1940_v16 = vpop.f32.mrb[22].mxu1  ;;  %vm2280_vm11 = vcmp.gt.f32.partialorder %v1880_v1, 0.0 }
 0x2b0   : > { %2602 = vst [vmem:[%s4229_s19 + $0x98] sm:$0xff] %v2538_v22  ;;  %v2343_v39 = vmul.f32 0.1, %v1878_v38  ;;  %v2344_v40 = vmul.f32 0.1, %v1880_v1  ;;  %vm2297_vm12 = vcmp.gt.f32.partialorder %v1937_v30, 0.0  ;;  %v1939_v50 = vadd.f32 %v1938_v41, %v4225_v35 }
 0x2b1   : > { %2583 = vst [vmem:[%s4229_s19] sm:$0xff] %v2519_v21  ;;  %v2392_v25 = vsel %vm2264_vm9, %v1876_v53, %v2328_v43  ;;  %v2361_v36 = vmul.f32 0.1, %v1937_v30  ;;  %v1883_v47 = vpop.f32.mrb[20].mxu0  ;;  %v1941_v59 = vadd.f32 %v1940_v16, %v4237_v19  ;;  %v1942_v13 = vpop.f32.mrb[23].mxu1  ;;  %v4285_v22 = vld [vmem:[%s3339_s13 + $0x10] sm:$0xff]  ;;  %v2476_v41 = vunpack.c.h.bf16 %v4290_v49  ;;  %v4296_v16 = vld [vmem:[%s3339_s13 + $0x98] sm:$0xff] }
 0x2b2   : > { %v2520_v28 = vadd.f32 %v2456_v18, %v2392_v25  ;;  %v2407_v33 = vsel %vm2279_vm10, %v1878_v38, %v2343_v39  ;;  %v2408_v27 = vsel %vm2280_vm11, %v1880_v1, %v2344_v40  ;;  %v1884_v10 = vadd.f32 %v1883_v47, %v4225_v35  ;;  %v1885_v56 = vpop.f32.mrb[21].mxu0  ;;  %v4301_v25 = vld [vmem:[%s3339_s13 + $0x90] sm:$0xff] }
 0x2b3   : > { %v2535_v26 = vadd.f32 %v2471_v58, %v2407_v33  ;;  %v2536_v31 = vadd.f32 %v2472_v23, %v2408_v27  ;;  %v2425_v52 = vsel %vm2297_vm12, %v1937_v30, %v2361_v36  ;;  %vm2298_vm13 = vcmp.gt.f32.partialorder %v1939_v50, 0.0  ;;  %v1887_v62 = vpop.f32.mrb[22].mxu0  ;;  %v4311_v33 = vld [vmem:[%s3339_s13 + $0xd8] sm:$0xff] }
 0x2b4   : > { %2584 = vst [vmem:[%s4229_s19 + $0x8] sm:$0xff] %v2520_v28  ;;  %v2553_v7 = vadd.f32 %v2489_v9, %v2425_v52  ;;  %v2362_v18 = vmul.f32 0.1, %v1939_v50  ;;  %vm2295_vm14 = vcmp.gt.f32.partialorder %v1884_v10, 0.0  ;;  %v2359_v54 = vmul.f32 0.1, %v1884_v10 }
 0x2b5   : > { %v1889_v15 = vpop.f32.mrb[23].mxu0  ;;  %2599 = vst [vmem:[%s4229_s19 + $0x80] sm:$0xff] %v2535_v26  ;;  %2600 = vst [vmem:[%s4229_s19 + $0x88] sm:$0xff] %v2536_v31  ;;  %v1886_v12 = vadd.f32 %v1885_v56, %v4225_v35  ;;  %v1888_v58 = vadd.f32 %v1887_v62, %v4237_v19  ;;  %vm2313_vm15 = vcmp.gt.f32.partialorder %v1941_v59, 0.0  ;;  %v2377_v5 = vmul.f32 0.1, %v1941_v59 }
 0x2b6   : > { %2617 = vst [vmem:[%s4229_s19 + $0x110] sm:$0xff] %v2553_v7  ;;  %v2426_v23 = vsel %vm2298_vm13, %v1939_v50, %v2362_v18  ;;  %v2423_v42 = vsel %vm2295_vm14, %v1884_v10, %v2359_v54  ;;  %v1890_v0 = vadd.f32 %v1889_v15, %v4237_v19  ;;  %v1943_v9 = vadd.f32 %v1942_v13, %v4237_v19  ;;  %v4307_v13 = vld [vmem:[%s3339_s13 + $0xd0] sm:$0xff] }
 0x2b7   : > { %v2554_v2 = vadd.f32 %v2490_v29, %v2426_v23  ;;  %v2551_v24 = vadd.f32 %v2487_v6, %v2423_v42  ;;  %vm2296_vm0 = vcmp.gt.f32.partialorder %v1886_v12, 0.0  ;;  %v2360_v14 = vmul.f32 0.1, %v1886_v12 }
 0x2b8   : > { %vm2311_vm1 = vcmp.gt.f32.partialorder %v1888_v58, 0.0  ;;  %v2375_v11 = vmul.f32 0.1, %v1888_v58  ;;  %v2441_v44 = vsel %vm2313_vm15, %v1941_v59, %v2377_v5  ;;  %vm2312_vm2 = vcmp.gt.f32.partialorder %v1890_v0, 0.0 }
 0x2b9   : > { %2618 = vst [vmem:[%s4229_s19 + $0x118] sm:$0xff] %v2554_v2  ;;  %2615 = vst [vmem:[%s4229_s19 + $0x100] sm:$0xff] %v2551_v24  ;;  %v2424_v57 = vsel %vm2296_vm0, %v1886_v12, %v2360_v14  ;;  %v2569_v17 = vadd.f32 %v2505_v55, %v2441_v44  ;;  %v2376_v29 = vmul.f32 0.1, %v1890_v0  ;;  %vm2314_vm3 = vcmp.gt.f32.partialorder %v1943_v9, 0.0 }
 0x2ba   : > { %v2552_v6 = vadd.f32 %v2488_v8, %v2424_v57  ;;  %v2439_v60 = vsel %vm2311_vm1, %v1888_v58, %v2375_v11  ;;  %v2378_v32 = vmul.f32 0.1, %v1943_v9  ;;  %v3063_v8 = vld [vmem:[%s3339_s13 + $0x18] sm:$0xff]  ;;  %v2459_v45 = vunpack.c.l.bf16 %v4285_v22 }
 0x2bb   : > { %v2567_v46 = vadd.f32 %v2503_v48, %v2439_v60  ;;  %2633 = vst [vmem:[%s4229_s19 + $0x190] sm:$0xff] %v2569_v17  ;;  %v2440_v51 = vsel %vm2312_vm2, %v1890_v0, %v2376_v29  ;;  %v2461_v38 = vunpack.c.l.bf16 %v3063_v8  ;;  %v2462_v20 = vunpack.c.h.bf16 %v3063_v8  ;;  %v3064_v48 = vld [vmem:[%s3339_s13 + $0x58] sm:$0xff] }
 0x2bc   : > { %2616 = vst [vmem:[%s4229_s19 + $0x108] sm:$0xff] %v2552_v6  ;;  %v2568_v53 = vadd.f32 %v2504_v61, %v2440_v51  ;;  %v2442_v55 = vsel %vm2314_vm3, %v1943_v9, %v2378_v32  ;;  %v2477_v3 = vunpack.c.l.bf16 %v3064_v48  ;;  %v2478_v1 = vunpack.c.h.bf16 %v3064_v48 }
 0x2bd   : > { %2631 = vst [vmem:[%s4229_s19 + $0x180] sm:$0xff] %v2567_v46  ;;  %v2570_v4 = vadd.f32 %v2506_v34, %v2442_v55  ;;  %v2460_v30 = vunpack.c.h.bf16 %v4285_v22  ;;  %v2475_v34 = vunpack.c.l.bf16 %v4290_v49  ;;  %v2493_v39 = vunpack.c.l.bf16 %v4296_v16 }
 0x2be   : > { %2632 = vst [vmem:[%s4229_s19 + $0x188] sm:$0xff] %v2568_v53  ;;  %v2494_v40 = vunpack.c.h.bf16 %v4296_v16  ;;  %v2491_v36 = vunpack.c.l.bf16 %v4301_v25  ;;  %v2492_v59 = vunpack.c.h.bf16 %v4301_v25  ;;  %v2507_v28 = vunpack.c.l.bf16 %v4307_v13 }
 0x2bf   : > { %2634 = vst [vmem:[%s4229_s19 + $0x198] sm:$0xff] %v2570_v4  ;;  %v2509_v27 = vunpack.c.l.bf16 %v4311_v33  ;;  %v2508_v31 = vunpack.c.h.bf16 %v4307_v13  ;;  %v2510_v18 = vunpack.c.h.bf16 %v4311_v33  ;;  %v4376_v33 = vld [vmem:[%s3339_s13 + $0x60] sm:$0xff] }
 0x2c9   : > { %v2032_v61 = vpop.f32.mrb[24].mxu1 }
 0x2ca   : > { %v2033_v21 = vadd.f32 %v2032_v61, %v4191_v63  ;;  %v2034_v43 = vpop.f32.mrb[25].mxu1 }
 0x2cb   : > { %v2035_v50 = vadd.f32 %v2034_v43, %v4191_v63  ;;  %v2036_v47 = vpop.f32.mrb[26].mxu1 }
 0x2cc   : > { %vm2269_vm4 = vcmp.gt.f32.partialorder %v2033_v21, 0.0  ;;  %v2333_v10 = vmul.f32 0.1, %v2033_v21  ;;  %v2037_v56 = vadd.f32 %v2036_v47, %v4194_v37  ;;  %v2038_v26 = vpop.f32.mrb[27].mxu1  ;;  %v1979_v62 = vpop.f32.mrb[24].mxu0 }
 0x2cd   : > { %vm2270_vm5 = vcmp.gt.f32.partialorder %v2035_v50, 0.0  ;;  %v2334_v52 = vmul.f32 0.1, %v2035_v50  ;;  %v2039_v7 = vadd.f32 %v2038_v26, %v4194_v37  ;;  %v1980_v12 = vadd.f32 %v1979_v62, %v4191_v63  ;;  %v1981_v58 = vpop.f32.mrb[25].mxu0 }
 0x2ce   : > { %v2397_v54 = vsel %vm2269_vm4, %v2033_v21, %v2333_v10  ;;  %vm2285_vm6 = vcmp.gt.f32.partialorder %v2037_v56, 0.0  ;;  %v2349_v15 = vmul.f32 0.1, %v2037_v56  ;;  %v1983_v0 = vpop.f32.mrb[26].mxu0  ;;  %v1982_v57 = vadd.f32 %v1981_v58, %v4191_v63 }
 0x2cf   : > { %v2525_v5 = vadd.f32 %v2461_v38, %v2397_v54  ;;  %v2398_v23 = vsel %vm2270_vm5, %v2035_v50, %v2334_v52  ;;  %vm2286_vm7 = vcmp.gt.f32.partialorder %v2039_v7, 0.0  ;;  %v2350_v42 = vmul.f32 0.1, %v2039_v7  ;;  %v1985_v14 = vpop.f32.mrb[27].mxu0 }
 0x2d0   : > { %v2526_v9 = vadd.f32 %v2462_v20, %v2398_v23  ;;  %v2413_v2 = vsel %vm2285_vm6, %v2037_v56, %v2349_v15  ;;  %vm2267_vm8 = vcmp.gt.f32.partialorder %v1980_v12, 0.0  ;;  %v2331_v24 = vmul.f32 0.1, %v1980_v12 }
 0x2d1   : > { %2589 = vst [vmem:[%s4229_s19 + $0x30] sm:$0xff] %v2525_v5  ;;  %v2541_v11 = vadd.f32 %v2477_v3, %v2413_v2  ;;  %v2414_v44 = vsel %vm2286_vm7, %v2039_v7, %v2350_v42  ;;  %v1984_v17 = vadd.f32 %v1983_v0, %v4194_v37  ;;  %v2042_v29 = vpop.f32.mrb[28].mxu1  ;;  %v1986_v32 = vadd.f32 %v1985_v14, %v4194_v37 }
 0x2d2   : > { %2590 = vst [vmem:[%s4229_s19 + $0x38] sm:$0xff] %v2526_v9  ;;  %v2395_v6 = vsel %vm2267_vm8, %v1980_v12, %v2331_v24  ;;  %v2542_v60 = vadd.f32 %v2478_v1, %v2414_v44  ;;  %v2043_v46 = vadd.f32 %v2042_v29, %v4225_v35  ;;  %v2044_v51 = vpop.f32.mrb[29].mxu1  ;;  %vm2268_vm9 = vcmp.gt.f32.partialorder %v1982_v57, 0.0 }
 0x2d3   : > { %2605 = vst [vmem:[%s4229_s19 + $0xb0] sm:$0xff] %v2541_v11  ;;  %v2523_v53 = vadd.f32 %v2459_v45, %v2395_v6  ;;  %v2332_v55 = vmul.f32 0.1, %v1982_v57  ;;  %vm2283_vm10 = vcmp.gt.f32.partialorder %v1984_v17, 0.0  ;;  %v2046_v4 = vpop.f32.mrb[30].mxu1  ;;  %vm2284_vm11 = vcmp.gt.f32.partialorder %v1986_v32, 0.0 }
 0x2d4   : > { %2606 = vst [vmem:[%s4229_s19 + $0xb8] sm:$0xff] %v2542_v60  ;;  %v2347_v8 = vmul.f32 0.1, %v1984_v17  ;;  %v2348_v38 = vmul.f32 0.1, %v1986_v32  ;;  %vm2301_vm12 = vcmp.gt.f32.partialorder %v2043_v46, 0.0  ;;  %v2045_v3 = vadd.f32 %v2044_v51, %v4225_v35 }
 0x2d5   : > { %2587 = vst [vmem:[%s4229_s19 + $0x20] sm:$0xff] %v2523_v53  ;;  %v2396_v20 = vsel %vm2268_vm9, %v1982_v57, %v2332_v55  ;;  %v2365_v48 = vmul.f32 0.1, %v2043_v46  ;;  %v1989_v61 = vpop.f32.mrb[28].mxu0  ;;  %v2047_v1 = vadd.f32 %v2046_v4, %v4237_v19  ;;  %v2048_v21 = vpop.f32.mrb[31].mxu1  ;;  %v4371_v60 = vld [vmem:[%s3339_s13 + $0x20] sm:$0xff]  ;;  %v2480_v51 = vunpack.c.h.bf16 %v4376_v33 }
 0x2d6   : > { %v2524_v45 = vadd.f32 %v2460_v30, %v2396_v20  ;;  %v2411_v43 = vsel %vm2283_vm10, %v1984_v17, %v2347_v8  ;;  %v2412_v50 = vsel %vm2284_vm11, %v1986_v32, %v2348_v38  ;;  %v1990_v47 = vadd.f32 %v1989_v61, %v4225_v35  ;;  %v1991_v10 = vpop.f32.mrb[29].mxu0  ;;  %v4382_v4 = vld [vmem:[%s3339_s13 + $0xa8] sm:$0xff]  ;;  %v4387_v20 = vld [vmem:[%s3339_s13 + $0xa0] sm:$0xff] }
 0x2d7   : > { %v2539_v56 = vadd.f32 %v2475_v34, %v2411_v43  ;;  %v2540_v26 = vadd.f32 %v2476_v41, %v2412_v50  ;;  %v2429_v52 = vsel %vm2301_vm12, %v2043_v46, %v2365_v48  ;;  %vm2302_vm13 = vcmp.gt.f32.partialorder %v2045_v3, 0.0  ;;  %v1993_v62 = vpop.f32.mrb[30].mxu0  ;;  %v4397_v43 = vld [vmem:[%s3339_s13 + $0xe8] sm:$0xff] }
 0x2d8   : > { %2588 = vst [vmem:[%s4229_s19 + $0x28] sm:$0xff] %v2524_v45  ;;  %v2557_v22 = vadd.f32 %v2493_v39, %v2429_v52  ;;  %v2366_v30 = vmul.f32 0.1, %v2045_v3  ;;  %vm2299_vm14 = vcmp.gt.f32.partialorder %v1990_v47, 0.0  ;;  %v2363_v7 = vmul.f32 0.1, %v1990_v47 }
 0x2d9   : > { %v1995_v54 = vpop.f32.mrb[31].mxu0  ;;  %2603 = vst [vmem:[%s4229_s19 + $0xa0] sm:$0xff] %v2539_v56  ;;  %2604 = vst [vmem:[%s4229_s19 + $0xa8] sm:$0xff] %v2540_v26  ;;  %v1992_v15 = vadd.f32 %v1991_v10, %v4225_v35  ;;  %v1994_v34 = vadd.f32 %v1993_v62, %v4237_v19  ;;  %vm2317_vm15 = vcmp.gt.f32.partialorder %v2047_v1, 0.0  ;;  %v2381_v49 = vmul.f32 0.1, %v2047_v1 }
 0x2da   : > { %2621 = vst [vmem:[%s4229_s19 + $0x130] sm:$0xff] %v2557_v22  ;;  %v2430_v41 = vsel %vm2302_vm13, %v2045_v3, %v2366_v30  ;;  %v2427_v12 = vsel %vm2299_vm14, %v1990_v47, %v2363_v7  ;;  %v1996_v58 = vadd.f32 %v1995_v54, %v4237_v19  ;;  %v2049_v39 = vadd.f32 %v2048_v21, %v4237_v19  ;;  %v4393_v21 = vld [vmem:[%s3339_s13 + $0xe0] sm:$0xff] }
 0x2db   : > { %v2558_v5 = vadd.f32 %v2494_v40, %v2430_v41  ;;  %v2555_v23 = vadd.f32 %v2491_v36, %v2427_v12  ;;  %vm2300_vm0 = vcmp.gt.f32.partialorder %v1992_v15, 0.0  ;;  %v2364_v42 = vmul.f32 0.1, %v1992_v15 }
 0x2dc   : > { %vm2315_vm1 = vcmp.gt.f32.partialorder %v1994_v34, 0.0  ;;  %v2379_v0 = vmul.f32 0.1, %v1994_v34  ;;  %v2445_v9 = vsel %vm2317_vm15, %v2047_v1, %v2381_v49  ;;  %vm2316_vm2 = vcmp.gt.f32.partialorder %v1996_v58, 0.0 }
 0x2dd   : > { %2622 = vst [vmem:[%s4229_s19 + $0x138] sm:$0xff] %v2558_v5  ;;  %2619 = vst [vmem:[%s4229_s19 + $0x120] sm:$0xff] %v2555_v23  ;;  %v2428_v2 = vsel %vm2300_vm0, %v1992_v15, %v2364_v42  ;;  %v2573_v16 = vadd.f32 %v2509_v27, %v2445_v9  ;;  %v2380_v40 = vmul.f32 0.1, %v1996_v58  ;;  %vm2318_vm3 = vcmp.gt.f32.partialorder %v2049_v39, 0.0 }
 0x2de   : > { %v2556_v36 = vadd.f32 %v2492_v59, %v2428_v2  ;;  %v2443_v24 = vsel %vm2315_vm1, %v1994_v34, %v2379_v0  ;;  %v2382_v14 = vmul.f32 0.1, %v2049_v39  ;;  %v3071_v59 = vld [vmem:[%s3339_s13 + $0x28] sm:$0xff]  ;;  %v2463_v13 = vunpack.c.l.bf16 %v4371_v60 }
 0x2df   : > { %v2571_v11 = vadd.f32 %v2507_v28, %v2443_v24  ;;  %2637 = vst [vmem:[%s4229_s19 + $0x1b0] sm:$0xff] %v2573_v16  ;;  %v2444_v44 = vsel %vm2316_vm2, %v1996_v58, %v2380_v40  ;;  %v2465_v17 = vunpack.c.l.bf16 %v3071_v59  ;;  %v2466_v29 = vunpack.c.h.bf16 %v3071_v59  ;;  %v3072_v28 = vld [vmem:[%s3339_s13 + $0x68] sm:$0xff] }
 0x2e0   : > { %2620 = vst [vmem:[%s4229_s19 + $0x128] sm:$0xff] %v2556_v36  ;;  %v2572_v57 = vadd.f32 %v2508_v31, %v2444_v44  ;;  %v2446_v27 = vsel %vm2318_vm3, %v2049_v39, %v2382_v14  ;;  %v2481_v6 = vunpack.c.l.bf16 %v3072_v28  ;;  %v2482_v32 = vunpack.c.h.bf16 %v3072_v28 }
 0x2e1   : > { %2635 = vst [vmem:[%s4229_s19 + $0x1a0] sm:$0xff] %v2571_v11  ;;  %v2574_v25 = vadd.f32 %v2510_v18, %v2446_v27  ;;  %v2464_v46 = vunpack.c.h.bf16 %v4371_v60  ;;  %v2479_v18 = vunpack.c.l.bf16 %v4376_v33  ;;  %v2497_v8 = vunpack.c.l.bf16 %v4382_v4 }
 0x2e2   : > { %2636 = vst [vmem:[%s4229_s19 + $0x1a8] sm:$0xff] %v2572_v57  ;;  %v2498_v38 = vunpack.c.h.bf16 %v4382_v4  ;;  %v2495_v48 = vunpack.c.l.bf16 %v4387_v20  ;;  %v2496_v1 = vunpack.c.h.bf16 %v4387_v20  ;;  %v2511_v45 = vunpack.c.l.bf16 %v4393_v21 }
 0x2e3   : > { %2638 = vst [vmem:[%s4229_s19 + $0x1b8] sm:$0xff] %v2574_v25  ;;  %v2513_v50 = vunpack.c.l.bf16 %v4397_v43  ;;  %v2512_v26 = vunpack.c.h.bf16 %v4393_v21  ;;  %v2514_v30 = vunpack.c.h.bf16 %v4397_v43  ;;  %v4462_v43 = vld [vmem:[%s3339_s13 + $0x70] sm:$0xff] }
 0x2ed   : > { %v2138_v31 = vpop.f32.mrb[32].mxu1 }
 0x2ee   : > { %v2139_v53 = vadd.f32 %v2138_v31, %v4191_v63  ;;  %v2140_v55 = vpop.f32.mrb[33].mxu1 }
 0x2ef   : > { %v2141_v3 = vadd.f32 %v2140_v55, %v4191_v63  ;;  %v2142_v61 = vpop.f32.mrb[34].mxu1 }
 0x2f0   : > { %vm2273_vm4 = vcmp.gt.f32.partialorder %v2139_v53, 0.0  ;;  %v2337_v47 = vmul.f32 0.1, %v2139_v53  ;;  %v2143_v10 = vadd.f32 %v2142_v61, %v4194_v37  ;;  %v2144_v56 = vpop.f32.mrb[35].mxu1  ;;  %v2085_v62 = vpop.f32.mrb[32].mxu0 }
 0x2f1   : > { %vm2274_vm5 = vcmp.gt.f32.partialorder %v2141_v3, 0.0  ;;  %v2338_v52 = vmul.f32 0.1, %v2141_v3  ;;  %v2145_v22 = vadd.f32 %v2144_v56, %v4194_v37  ;;  %v2086_v15 = vadd.f32 %v2085_v62, %v4191_v63  ;;  %v2087_v34 = vpop.f32.mrb[33].mxu0 }
 0x2f2   : > { %v2401_v7 = vsel %vm2273_vm4, %v2139_v53, %v2337_v47  ;;  %vm2289_vm6 = vcmp.gt.f32.partialorder %v2143_v10, 0.0  ;;  %v2353_v54 = vmul.f32 0.1, %v2143_v10  ;;  %v2089_v58 = vpop.f32.mrb[34].mxu0  ;;  %v2088_v2 = vadd.f32 %v2087_v34, %v4191_v63 }
 0x2f3   : > { %v2529_v49 = vadd.f32 %v2465_v17, %v2401_v7  ;;  %v2402_v41 = vsel %vm2274_vm5, %v2141_v3, %v2338_v52  ;;  %vm2290_vm7 = vcmp.gt.f32.partialorder %v2145_v22, 0.0  ;;  %v2354_v12 = vmul.f32 0.1, %v2145_v22  ;;  %v2091_v42 = vpop.f32.mrb[35].mxu0 }
 0x2f4   : > { %v2530_v39 = vadd.f32 %v2466_v29, %v2402_v41  ;;  %v2417_v5 = vsel %vm2289_vm6, %v2143_v10, %v2353_v54  ;;  %vm2271_vm8 = vcmp.gt.f32.partialorder %v2086_v15, 0.0  ;;  %v2335_v23 = vmul.f32 0.1, %v2086_v15 }
 0x2f5   : > { %2593 = vst [vmem:[%s4229_s19 + $0x50] sm:$0xff] %v2529_v49  ;;  %v2545_v0 = vadd.f32 %v2481_v6, %v2417_v5  ;;  %v2418_v9 = vsel %vm2290_vm7, %v2145_v22, %v2354_v12  ;;  %v2090_v16 = vadd.f32 %v2089_v58, %v4194_v37  ;;  %v2148_v40 = vpop.f32.mrb[36].mxu1  ;;  %v2092_v14 = vadd.f32 %v2091_v42, %v4194_v37 }
 0x2f6   : > { %2594 = vst [vmem:[%s4229_s19 + $0x58] sm:$0xff] %v2530_v39  ;;  %v2399_v36 = vsel %vm2271_vm8, %v2086_v15, %v2335_v23  ;;  %v2546_v24 = vadd.f32 %v2482_v32, %v2418_v9  ;;  %v2149_v11 = vadd.f32 %v2148_v40, %v4225_v35  ;;  %v2150_v44 = vpop.f32.mrb[37].mxu1  ;;  %vm2272_vm9 = vcmp.gt.f32.partialorder %v2088_v2, 0.0 }
 0x2f7   : > { %2609 = vst [vmem:[%s4229_s19 + $0xd0] sm:$0xff] %v2545_v0  ;;  %v2527_v57 = vadd.f32 %v2463_v13, %v2399_v36  ;;  %v2336_v27 = vmul.f32 0.1, %v2088_v2  ;;  %vm2287_vm10 = vcmp.gt.f32.partialorder %v2090_v16, 0.0  ;;  %v2152_v25 = vpop.f32.mrb[38].mxu1  ;;  %vm2288_vm11 = vcmp.gt.f32.partialorder %v2092_v14, 0.0 }
 0x2f8   : > { %2610 = vst [vmem:[%s4229_s19 + $0xd8] sm:$0xff] %v2546_v24  ;;  %v2351_v59 = vmul.f32 0.1, %v2090_v16  ;;  %v2352_v17 = vmul.f32 0.1, %v2092_v14  ;;  %vm2305_vm12 = vcmp.gt.f32.partialorder %v2149_v11, 0.0  ;;  %v2151_v6 = vadd.f32 %v2150_v44, %v4225_v35 }
 0x2f9   : > { %2591 = vst [vmem:[%s4229_s19 + $0x40] sm:$0xff] %v2527_v57  ;;  %v2400_v29 = vsel %vm2272_vm9, %v2088_v2, %v2336_v27  ;;  %v2369_v28 = vmul.f32 0.1, %v2149_v11  ;;  %v2095_v31 = vpop.f32.mrb[36].mxu0  ;;  %v2153_v32 = vadd.f32 %v2152_v25, %v4237_v19  ;;  %v2154_v53 = vpop.f32.mrb[39].mxu1  ;;  %v4457_v24 = vld [vmem:[%s3339_s13 + $0x30] sm:$0xff]  ;;  %v2484_v44 = vunpack.c.h.bf16 %v4462_v43 }
 0x2fa   : > { %v2528_v13 = vadd.f32 %v2464_v46, %v2400_v29  ;;  %v2415_v55 = vsel %vm2287_vm10, %v2090_v16, %v2351_v59  ;;  %v2416_v3 = vsel %vm2288_vm11, %v2092_v14, %v2352_v17  ;;  %v2096_v61 = vadd.f32 %v2095_v31, %v4225_v35  ;;  %v2097_v47 = vpop.f32.mrb[37].mxu0  ;;  %v4468_v25 = vld [vmem:[%s3339_s13 + $0xb8] sm:$0xff] }
 0x2fb   : > { %v2543_v10 = vadd.f32 %v2479_v18, %v2415_v55  ;;  %v2544_v56 = vadd.f32 %v2480_v51, %v2416_v3  ;;  %v2433_v52 = vsel %vm2305_vm12, %v2149_v11, %v2369_v28  ;;  %vm2306_vm13 = vcmp.gt.f32.partialorder %v2151_v6, 0.0  ;;  %v2099_v62 = vpop.f32.mrb[38].mxu0  ;;  %v4473_v29 = vld [vmem:[%s3339_s13 + $0xf8] sm:$0xff] }
 0x2fc   : > { %2592 = vst [vmem:[%s4229_s19 + $0x48] sm:$0xff] %v2528_v13  ;;  %v2561_v60 = vadd.f32 %v2497_v8, %v2433_v52  ;;  %v2370_v46 = vmul.f32 0.1, %v2151_v6  ;;  %vm2303_vm14 = vcmp.gt.f32.partialorder %v2096_v61, 0.0  ;;  %v2367_v22 = vmul.f32 0.1, %v2096_v61 }
 0x2fd   : > { %v2101_v7 = vpop.f32.mrb[39].mxu0  ;;  %2607 = vst [vmem:[%s4229_s19 + $0xc0] sm:$0xff] %v2543_v10  ;;  %2608 = vst [vmem:[%s4229_s19 + $0xc8] sm:$0xff] %v2544_v56  ;;  %v2098_v54 = vadd.f32 %v2097_v47, %v4225_v35  ;;  %v2100_v18 = vadd.f32 %v2099_v62, %v4237_v19  ;;  %vm2321_vm15 = vcmp.gt.f32.partialorder %v2153_v32, 0.0  ;;  %v2385_v33 = vmul.f32 0.1, %v2153_v32 }
 0x2fe   : > { %2625 = vst [vmem:[%s4229_s19 + $0x150] sm:$0xff] %v2561_v60  ;;  %v2434_v51 = vsel %vm2306_vm13, %v2151_v6, %v2370_v46  ;;  %v2431_v15 = vsel %vm2303_vm14, %v2096_v61, %v2367_v22  ;;  %v2102_v34 = vadd.f32 %v2101_v7, %v4237_v19  ;;  %v2155_v8 = vadd.f32 %v2154_v53, %v4237_v19  ;;  %v4485_v10 = vld [vmem:[%s3339_s13 + $0xf0] sm:$0xff] }
 0x2ff   : > { %v2562_v49 = vadd.f32 %v2498_v38, %v2434_v51  ;;  %v2559_v41 = vadd.f32 %v2495_v48, %v2431_v15  ;;  %vm2304_vm0 = vcmp.gt.f32.partialorder %v2098_v54, 0.0  ;;  %v2368_v12 = vmul.f32 0.1, %v2098_v54 }
 0x300   : > { %vm2319_vm1 = vcmp.gt.f32.partialorder %v2100_v18, 0.0  ;;  %v2383_v58 = vmul.f32 0.1, %v2100_v18  ;;  %v2449_v39 = vsel %vm2321_vm15, %v2153_v32, %v2385_v33  ;;  %vm2320_vm2 = vcmp.gt.f32.partialorder %v2102_v34, 0.0  ;;  %v4478_v32 = vld [vmem:[%s3339_s13 + $0xb0] sm:$0xff] }
 0x301   : > { %2626 = vst [vmem:[%s4229_s19 + $0x158] sm:$0xff] %v2562_v49  ;;  %2623 = vst [vmem:[%s4229_s19 + $0x140] sm:$0xff] %v2559_v41  ;;  %v2432_v5 = vsel %vm2304_vm0, %v2098_v54, %v2368_v12  ;;  %v2577_v4 = vadd.f32 %v2513_v50, %v2449_v39  ;;  %v2384_v38 = vmul.f32 0.1, %v2102_v34  ;;  %vm2322_vm3 = vcmp.gt.f32.partialorder %v2155_v8, 0.0 }
 0x302   : > { %v2560_v48 = vadd.f32 %v2496_v1, %v2432_v5  ;;  %v2447_v23 = vsel %vm2319_vm1, %v2100_v18, %v2383_v58  ;;  %v2386_v42 = vmul.f32 0.1, %v2155_v8  ;;  %v3079_v1 = vld [vmem:[%s3339_s13 + $0x38] sm:$0xff]  ;;  %v2467_v21 = vunpack.c.l.bf16 %v4457_v24 }
 0x303   : > { %v2575_v0 = vadd.f32 %v2511_v45, %v2447_v23  ;;  %2641 = vst [vmem:[%s4229_s19 + $0x1d0] sm:$0xff] %v2577_v4  ;;  %v2448_v9 = vsel %vm2320_vm2, %v2102_v34, %v2384_v38  ;;  %v2469_v16 = vunpack.c.l.bf16 %v3079_v1  ;;  %v2470_v40 = vunpack.c.h.bf16 %v3079_v1  ;;  %v3080_v45 = vld [vmem:[%s3339_s13 + $0x78] sm:$0xff]  ;;  %s2810_s13 = sshll.u32 %s3252_s25, 13 }
 0x304   : > { %2624 = vst [vmem:[%s4229_s19 + $0x148] sm:$0xff] %v2560_v48  ;;  %v2576_v2 = vadd.f32 %v2512_v26, %v2448_v9  ;;  %v2450_v50 = vsel %vm2322_vm3, %v2155_v8, %v2386_v42  ;;  %v2485_v36 = vunpack.c.l.bf16 %v3080_v45  ;;  %v2486_v14 = vunpack.c.h.bf16 %v3080_v45  ;;  %s4537_s14 = scalar_lea.hbm %s4597_s6, %s2810_s13 }
 0x305   : > { %2639 = vst [vmem:[%s4229_s19 + $0x1c0] sm:$0xff] %v2575_v0  ;;  %v2578_v20 = vadd.f32 %v2514_v30, %v2450_v50  ;;  %v2468_v11 = vunpack.c.h.bf16 %v4457_v24  ;;  %v2483_v30 = vunpack.c.l.bf16 %v4462_v43  ;;  %v2501_v59 = vunpack.c.l.bf16 %v4468_v25 }
 0x306   : > { %2640 = vst [vmem:[%s4229_s19 + $0x1c8] sm:$0xff] %v2576_v2  ;;  %v2502_v17 = vunpack.c.h.bf16 %v4468_v25  ;;  %v2517_v28 = vunpack.c.l.bf16 %v4473_v29  ;;  %v2499_v53 = vunpack.c.l.bf16 %v4478_v32  ;;  %v2518_v13 = vunpack.c.h.bf16 %v4473_v29 }
 0x307   : > { %2642 = vst [vmem:[%s4229_s19 + $0x1d8] sm:$0xff] %v2578_v20  ;;  %v2500_v55 = vunpack.c.h.bf16 %v4478_v32  ;;  %v2515_v56 = vunpack.c.l.bf16 %v4485_v10  ;;  %v2516_v46 = vunpack.c.h.bf16 %v4485_v10 }
 0x311   : > { %v2244_v26 = vpop.f32.mrb[40].mxu1 }
 0x312   : > { %v2245_v57 = vadd.f32 %v2244_v26, %v4191_v63  ;;  %v2246_v27 = vpop.f32.mrb[41].mxu1 }
 0x313   : > { %v2247_v6 = vadd.f32 %v2246_v27, %v4191_v63  ;;  %v2248_v31 = vpop.f32.mrb[42].mxu1 }
 0x314   : > { %vm2277_vm4 = vcmp.gt.f32.partialorder %v2245_v57, 0.0  ;;  %v2341_v3 = vmul.f32 0.1, %v2245_v57  ;;  %v2249_v61 = vadd.f32 %v2248_v31, %v4194_v37  ;;  %v2250_v47 = vpop.f32.mrb[43].mxu1  ;;  %v2191_v62 = vpop.f32.mrb[40].mxu0 }
 0x315   : > { %vm2278_vm5 = vcmp.gt.f32.partialorder %v2247_v6, 0.0  ;;  %v2342_v52 = vmul.f32 0.1, %v2247_v6  ;;  %v2251_v60 = vadd.f32 %v2250_v47, %v4194_v37  ;;  %v2192_v54 = vadd.f32 %v2191_v62, %v4191_v63  ;;  %v2193_v18 = vpop.f32.mrb[41].mxu0 }
 0x316   : > { %v2405_v22 = vsel %vm2277_vm4, %v2245_v57, %v2341_v3  ;;  %vm2293_vm6 = vcmp.gt.f32.partialorder %v2249_v61, 0.0  ;;  %v2357_v7 = vmul.f32 0.1, %v2249_v61  ;;  %v2195_v34 = vpop.f32.mrb[42].mxu0  ;;  %v2194_v5 = vadd.f32 %v2193_v18, %v4191_v63 }
 0x317   : > { %v2533_v33 = vadd.f32 %v2469_v16, %v2405_v22  ;;  %v2406_v51 = vsel %vm2278_vm5, %v2247_v6, %v2342_v52  ;;  %vm2294_vm7 = vcmp.gt.f32.partialorder %v2251_v60, 0.0  ;;  %v2358_v15 = vmul.f32 0.1, %v2251_v60  ;;  %v2197_v12 = vpop.f32.mrb[43].mxu0 }
 0x318   : > { %v2534_v8 = vadd.f32 %v2470_v40, %v2406_v51  ;;  %v2421_v49 = vsel %vm2293_vm6, %v2249_v61, %v2357_v7  ;;  %vm2275_vm8 = vcmp.gt.f32.partialorder %v2192_v54, 0.0  ;;  %v2339_v41 = vmul.f32 0.1, %v2192_v54 }
 0x319   : > { %2597 = vst [vmem:[%s4229_s19 + $0x70] sm:$0xff] %v2533_v33  ;;  %v2549_v58 = vadd.f32 %v2485_v36, %v2421_v49  ;;  %v2422_v39 = vsel %vm2294_vm7, %v2251_v60, %v2358_v15  ;;  %v2196_v4 = vadd.f32 %v2195_v34, %v4194_v37  ;;  %v2254_v38 = vpop.f32.mrb[44].mxu1  ;;  %v2198_v42 = vadd.f32 %v2197_v12, %v4194_v37 }
 0x31a   : > { %2598 = vst [vmem:[%s4229_s19 + $0x78] sm:$0xff] %v2534_v8  ;;  %v2403_v48 = vsel %vm2275_vm8, %v2192_v54, %v2339_v41  ;;  %v2550_v23 = vadd.f32 %v2486_v14, %v2422_v39  ;;  %v2255_v0 = vadd.f32 %v2254_v38, %v4225_v35  ;;  %v2256_v9 = vpop.f32.mrb[45].mxu1  ;;  %vm2276_vm9 = vcmp.gt.f32.partialorder %v2194_v5, 0.0 }
 0x31b   : > { %2613 = vst [vmem:[%s4229_s19 + $0xf0] sm:$0xff] %v2549_v58  ;;  %v2531_v2 = vadd.f32 %v2467_v21, %v2403_v48  ;;  %v2340_v50 = vmul.f32 0.1, %v2194_v5  ;;  %vm2291_vm10 = vcmp.gt.f32.partialorder %v2196_v4, 0.0  ;;  %v2258_v20 = vpop.f32.mrb[46].mxu1  ;;  %vm2292_vm11 = vcmp.gt.f32.partialorder %v2198_v42, 0.0 }
 0x31c   : > { %2614 = vst [vmem:[%s4229_s19 + $0xf8] sm:$0xff] %v2550_v23  ;;  %v2355_v63 = vmul.f32 0.1, %v2196_v4  ;;  %v2356_v1 = vmul.f32 0.1, %v2198_v42  ;;  %vm2309_vm12 = vcmp.gt.f32.partialorder %v2255_v0, 0.0  ;;  %v2257_v37 = vadd.f32 %v2256_v9, %v4225_v35 }
 0x31d   : > { %2595 = vst [vmem:[%s4229_s19 + $0x60] sm:$0xff] %v2531_v2  ;;  %v2404_v16 = vsel %vm2276_vm9, %v2194_v5, %v2340_v50  ;;  %v2373_v40 = vmul.f32 0.1, %v2255_v0  ;;  %v2259_v45 = vadd.f32 %v2258_v20, %v4237_v19  ;;  %v2201_v36 = vpop.f32.mrb[44].mxu0  ;;  %v2260_v26 = vpop.f32.mrb[47].mxu1 }
 0x31e   : > { %v2532_v21 = vadd.f32 %v2468_v11, %v2404_v16  ;;  %v2419_v14 = vsel %vm2291_vm10, %v2196_v4, %v2355_v63  ;;  %v2420_v57 = vsel %vm2292_vm11, %v2198_v42, %v2356_v1  ;;  %v2202_v27 = vadd.f32 %v2201_v36, %v4225_v35  ;;  %v2203_v6 = vpop.f32.mrb[45].mxu0 }
 0x31f   : > { %v2547_v31 = vadd.f32 %v2483_v30, %v2419_v14  ;;  %v2548_v3 = vadd.f32 %v2484_v44, %v2420_v57  ;;  %v2437_v61 = vsel %vm2309_vm12, %v2255_v0, %v2373_v40  ;;  %vm2310_vm13 = vcmp.gt.f32.partialorder %v2257_v37, 0.0  ;;  %v2205_v47 = vpop.f32.mrb[46].mxu0 }
 0x320   : > { %2596 = vst [vmem:[%s4229_s19 + $0x68] sm:$0xff] %v2532_v21  ;;  %v2565_v24 = vadd.f32 %v2501_v59, %v2437_v61  ;;  %v2374_v11 = vmul.f32 0.1, %v2257_v37  ;;  %vm2325_vm14 = vcmp.gt.f32.partialorder %v2259_v45, 0.0  ;;  %v2389_v52 = vmul.f32 0.1, %v2259_v45 }
 0x321   : > { %v2207_v62 = vpop.f32.mrb[47].mxu0  ;;  %2611 = vst [vmem:[%s4229_s19 + $0xe0] sm:$0xff] %v2547_v31  ;;  %2612 = vst [vmem:[%s4229_s19 + $0xe8] sm:$0xff] %v2548_v3  ;;  %vm2307_vm15 = vcmp.gt.f32.partialorder %v2202_v27, 0.0  ;;  %v2371_v30 = vmul.f32 0.1, %v2202_v27  ;;  %v2261_v43 = vadd.f32 %v2260_v26, %v4237_v19  ;;  %v2204_v44 = vadd.f32 %v2203_v6, %v4225_v35 }
 0x322   : > { %2629 = vst [vmem:[%s4229_s19 + $0x170] sm:$0xff] %v2565_v24  ;;  %v2438_v60 = vsel %vm2310_vm13, %v2257_v37, %v2374_v11  ;;  %v2453_v22 = vsel %vm2325_vm14, %v2259_v45, %v2389_v52  ;;  %v2206_v59 = vadd.f32 %v2205_v47, %v4237_v19  ;;  %v2208_v7 = vadd.f32 %v2207_v62, %v4237_v19 }
 0x323   : > { %v2566_v54 = vadd.f32 %v2502_v17, %v2438_v60  ;;  %v2581_v18 = vadd.f32 %v2517_v28, %v2453_v22  ;;  %v2435_v33 = vsel %vm2307_vm15, %v2202_v27, %v2371_v30  ;;  %vm2326_vm0 = vcmp.gt.f32.partialorder %v2261_v43, 0.0 }
 0x324   : > { %v2563_v35 = vadd.f32 %v2499_v53, %v2435_v33  ;;  %v2390_v51 = vmul.f32 0.1, %v2261_v43  ;;  %vm2308_vm1 = vcmp.gt.f32.partialorder %v2204_v44, 0.0  ;;  %v2372_v15 = vmul.f32 0.1, %v2204_v44 }
 0x325   : > { %2630 = vst [vmem:[%s4229_s19 + $0x178] sm:$0xff] %v2566_v54  ;;  %2645 = vst [vmem:[%s4229_s19 + $0x1f0] sm:$0xff] %v2581_v18  ;;  %vm2323_vm2 = vcmp.gt.f32.partialorder %v2206_v59, 0.0  ;;  %v2387_v19 = vmul.f32 0.1, %v2206_v59  ;;  %vm2324_vm3 = vcmp.gt.f32.partialorder %v2208_v7, 0.0 }
 0x326   : > { %v2388_v25 = vmul.f32 0.1, %v2208_v7  ;;  %2627 = vst [vmem:[%s4229_s19 + $0x160] sm:$0xff] %v2563_v35  ;;  %v2454_v17 = vsel %vm2326_vm0, %v2261_v43, %v2390_v51  ;;  %v2436_v28 = vsel %vm2308_vm1, %v2204_v44, %v2372_v15 }
 0x327   : > { %v2582_v53 = vadd.f32 %v2518_v13, %v2454_v17  ;;  %v2564_v34 = vadd.f32 %v2500_v55, %v2436_v28  ;;  %v2451_v8 = vsel %vm2323_vm2, %v2206_v59, %v2387_v19 }
 0x328   : > { %v2452_v49 = vsel %vm2324_vm3, %v2208_v7, %v2388_v25  ;;  %v2579_v29 = vadd.f32 %v2515_v56, %v2451_v8 }
 0x329   : > { %v2580_v13 = vadd.f32 %v2516_v46, %v2452_v49  ;;  %2646 = vst [vmem:[%s4229_s19 + $0x1f8] sm:$0xff] %v2582_v53  ;;  %2628 = vst [vmem:[%s4229_s19 + $0x168] sm:$0xff] %v2564_v34 }
 0x32a   : > { %2643 = vst [vmem:[%s4229_s19 + $0x1e0] sm:$0xff] %v2579_v29 }
 0x32b   : > { %2644 = vst [vmem:[%s4229_s19 + $0x1e8] sm:$0xff] %v2580_v13 }
 0x32c   : > { %3130 = shalt.err (!%p3127_p2)
}
 0x32d   : > { %s3131_s12 = scalar_lea.hbm %s4537_s14, 8192  ;;  %s3135_s18 = scalar_lea.hbm %s4597_s6, 16384 }
 0x32e   : > { %p3132_p4 = scmp.ne.s32.totalorder %s4537_s14, %s3131_s12  ;;  %p3136_p9 = scmp.lt.u32.totalorder %s4537_s14, %s4597_s6 }
 0x32f   : > { %p3137_p1 = scmp.lt.u32.totalorder %s3135_s18, %s3131_s12  ;;  %p3139_p6 = scmp.lt.u32.totalorder %s3131_s12, %s4537_s14 }
 0x330   : > { %p3133_p5 = pnand %p3132_p4, %p4604_p11 }
 0x331   : > { %p3138_p3 = por %p3137_p1, %p3136_p9 }
 0x332   : > { %p3134_p7 = pneg %p3133_p5 }
 0x333   : > { %p3140_p12 = por %p3139_p6, %p3138_p3 }
 0x335   : > { %p3141_p13 = pnand %p3140_p12, %p3134_p7 }
 0x337   : > { %3144 = shalt.err (!%p3141_p13)
}
 0x338   : > { %s3194_s25 = smov 2048   ;;  %s3195_s11 = smov 128  }
 0x339   : > { %2813 = dma.vmem_to_hbm [thread:$0]  (%p4604_p11), %s4539_s20, 8192, %s4537_s14, %s2648_s15, %s3194_s25, %s3194_s25, %s3195_s11  }
 0x33a PF: > { %s2676_s17 = sand.u32 1, %s3171_s21   ;;  %p4605_p8 = scmp.ne.s32.totalorder %s4602_s10, 0 }
 0x33b   : > { %p4606_p10 = scmp.ge.s32.totalorder %s3183_s24, 2  ;;  %s2677_s26 = scalar_lea.sflag [#allocation6], %s2676_s17 }
 0x33d   : > { %p2820_p0 = pnand %p4606_p10, %p4605_p8 }
 0x33f   : > { %3166 = dma.done.wait (!%p2820_p0), %s2677_s26, 8192  }
 0x340   : > { %3168 = vsyncadd (!%p2820_p0), %s2677_s26, 4294959104  ;;  %p19_p2 = scmp.ge.s32.totalorder %s3256_s27, 4   ;;  %s4607_s21 = smov %s3175_s22 }
 0x341   : > { %s4608_s22 = smov %s3179_s23  ;;  %s4609_s23 = smov %s3268_s30 }
 0x342   : > { %s4610_s24 = smov %s3256_s27  ;;  %21 = sbr.rel (!%p19_p2) target bundleno = 5 (0x5), region = 89 }
 0x349   :  { %2682 = vsyncpa [#allocation5], 1 }
 0x34a   :  { %2684 = vsyncpa [#allocation5 + $0x1], 1 }
 0x34b   :  { %2685 = vsyncpa [#allocation6], 1 }
 0x34c   :  { %2687 = vsyncpa [#allocation6 + $0x1], 1 }

</bundles_post_ra>
